<compile_context>
chip_gen: v7x
topology: tpu7x:2x2x1
jax: 0.10.0
libtpu: 0.0.40
codegen_flags: <defaults>
</compile_context>

<pallas_src>
import numpy as np
import jax
import jax.numpy as jnp
from jax import lax
from jax.experimental import pallas as pl
from jax.experimental.pallas import tpu as pltpu


def _round_up(x, m):
    return ((x + m - 1) // m) * m


# ---------------------------------------------------------------------------
# Kernel 1: packed GRU recurrence + NARM attention -> tmp = [c_local, ht] @ Wb
# ---------------------------------------------------------------------------
def narm_gru_attn_kernel(embs_ref, len_ref, w_i3_ref, w_h3_ref, b_i3_ref,
                         b_h3_ref, wa1_ref, wa2_ref, wv_ref, wbc_ref, wbh_ref,
                         tmp_ref, gru_sc):
    T, B, _ = embs_ref.shape
    Hp = wa1_ref.shape[0]                    # hidden size padded to 128 lanes

    w_i3 = w_i3_ref[...]                     # (E,  3*Hp) bf16, fused [r|z|n]
    w_h3 = w_h3_ref[...]                     # (Hp, 3*Hp) bf16
    b_i3 = b_i3_ref[...]                     # (1,  3*Hp) f32
    b_h3 = b_h3_ref[...]                     # (1,  3*Hp) f32
    lens = len_ref[...]                      # (B, 1) int32 valid lengths

    def step(t, h):
        x = embs_ref[t]                                               # (B, E) bf16
        m = (lens > t).astype(jnp.float32)                            # (B, 1)
        gx = jnp.dot(x, w_i3, preferred_element_type=jnp.float32) + b_i3
        gh = jnp.dot(h.astype(jnp.bfloat16), w_h3,
                     preferred_element_type=jnp.float32) + b_h3
        # gate slices are 128-lane aligned (Hp is a multiple of 128): free views
        r = jax.nn.sigmoid(gx[:, 0:Hp] + gh[:, 0:Hp])
        z = jax.nn.sigmoid(gx[:, Hp:2 * Hp] + gh[:, Hp:2 * Hp])
        n = jnp.tanh(gx[:, 2 * Hp:3 * Hp] + r * gh[:, 2 * Hp:3 * Hp])
        h_new = (1.0 - z) * n + z * h
        # pack_padded/pad_packed semantics: padded steps emit zeros and do not
        # advance the hidden state.
        out_t = m * h_new
        gru_sc[t] = out_t
        return out_t + (1.0 - m) * h

    ht = lax.fori_loop(0, T, step, jnp.zeros((B, Hp), jnp.float32), unroll=True)

    # ---- attention, vectorized over all T timesteps in one pass --------------
    g_all = gru_sc[...]                                               # (T, B, Hp)
    q1 = jnp.dot(g_all.reshape(T * B, Hp).astype(jnp.bfloat16), wa1_ref[...],
                 preferred_element_type=jnp.float32).reshape(T, B, Hp)
    q2 = jnp.dot(ht.astype(jnp.bfloat16), wa2_ref[...],
                 preferred_element_type=jnp.float32)                  # (B, Hp)
    # NOTE: the reference multiplies q2 by the (seq>0) mask before the sigmoid;
    # since g_all == 0 at padded steps (and a_1 has no bias), alpha*g is 0 there
    # either way, so dropping the mask is exact.
    e = jax.nn.sigmoid(q1 + q2[None, :, :])                           # (T, B, Hp)
    alpha = jnp.sum(e * wv_ref[...], axis=-1, keepdims=True)          # (T, B, 1)
    c_local = jnp.sum(alpha * g_all, axis=0)                          # (B, Hp)

    # tmp = [c_local, ht] @ Wb as two lane-aligned matmuls (no 2H lane concat)
    tmp = (jnp.dot(c_local.astype(jnp.bfloat16), wbc_ref[...],
                   preferred_element_type=jnp.float32) +
           jnp.dot(ht.astype(jnp.bfloat16), wbh_ref[...],
                   preferred_element_type=jnp.float32))               # (B, E) f32
    tmp_ref[...] = tmp.astype(tmp_ref.dtype)


# ---------------------------------------------------------------------------
# Kernel 2: scores_tile = tmp @ dequant(items_tile), streamed int8 item table
# ---------------------------------------------------------------------------
def narm_scores_kernel(tmp_ref, items_ref, scale_ref, out_ref):
    # int8 -> f32 -> bf16 convert chain (guaranteed lowering); bf16 x bf16 on
    # the MXU with f32 accumulation; per-item (per-lane) scale on the output.
    items = items_ref[...].astype(jnp.float32).astype(jnp.bfloat16)   # (E, TN)
    acc = jnp.dot(tmp_ref[...], items, preferred_element_type=jnp.float32)
    out_ref[...] = acc * scale_ref[...]


# ---------------------------------------------------------------------------
# One-time item-table preparation (hoisted out of the per-call path)
# ---------------------------------------------------------------------------
def prepare_item_table(W_emb, *, item_tile=8192):
    """Per-row symmetric int8 quantization + transpose to (E, N_pad).

    Cache the result across forward calls in a serving loop: the per-call path
    then streams half the bytes of a bf16 table and never re-casts/pads it.
    """
    n_items_p1, _ = W_emb.shape
    TN = min(_round_up(item_tile, 128), _round_up(n_items_p1, 128))
    n_pad = _round_up(n_items_p1, TN)
    absmax = jnp.max(jnp.abs(W_emb), axis=1, keepdims=True)            # (N+1, 1)
    scale = jnp.maximum(absmax, 1e-8) / 127.0
    q = jnp.clip(jnp.round(W_emb / scale), -127, 127).astype(jnp.int8)  # (N+1, E)
    items_q = jnp.pad(q.T, ((0, 0), (0, n_pad - n_items_p1)))          # (E, n_pad)
    scale_row = jnp.pad(scale.T, ((0, 0), (0, n_pad - n_items_p1)))    # (1, n_pad)
    # TODO(synk): on v7x prefer an fp8(e4m3) table (v7x MXU has no int8 path).
    return items_q, scale_row, TN


# ---------------------------------------------------------------------------
# Wrapper
# ---------------------------------------------------------------------------
def narm_forward(seq, lengths, params, item_table=None, *, item_tile=8192):
    """seq: (B, T) int32 item ids (0 == trailing pad), lengths: (B,)."""
    del lengths  # pack semantics are reproduced from the trailing seq == 0 pad
    W_emb, w_ih, w_hh, b_ih, b_hh, Wa1, Wa2, Wv, Wb = params
    B, T = seq.shape
    n_items_p1, E = W_emb.shape
    H = Wa1.shape[0]
    Hp = _round_up(H, 128)                               # lane-align every gate

    if B <= 256:
        B_pad = _round_up(max(B, 8), 8)
        B_tile = B_pad
    else:
        B_tile = 256
        B_pad = _round_up(B, B_tile)

    # ---- glue: embedding lookup (padding row 0 is zero), eval dropout = id ----
    embs = jnp.take(W_emb, seq, axis=0)                                # (B, T, E)
    embs_tbe = jnp.transpose(embs, (1, 0, 2))                          # (T, B, E)
    embs_tbe = jnp.pad(embs_tbe, ((0, 0), (0, B_pad - B), (0, 0)))
    embs_tbe = embs_tbe.astype(jnp.bfloat16)                           # bf16 MXU path
    len_col = jnp.sum((seq > 0).astype(jnp.int32), axis=1)[:, None]    # (B, 1)
    len_col = jnp.pad(len_col, ((0, B_pad - B), (0, 0)))               # (B_pad, 1)

    # ---- glue: repack GRU/attention weights, pad each gate block to Hp lanes --
    # (in a serving path these repacked/casted tensors would be cached once)
    def pack_gates(w, d_in, pad_in):                 # w: (3H, d_in) PyTorch layout
        w3 = w.reshape(3, H, d_in)
        w3 = jnp.pad(w3, ((0, 0), (0, Hp - H), (0, pad_in)))
        return jnp.transpose(w3, (2, 0, 1)).reshape(d_in + pad_in, 3 * Hp)

    def pack_gate_bias(b):
        return jnp.pad(b.reshape(3, H), ((0, 0), (0, Hp - H))).reshape(1, 3 * Hp)

    w_i3 = pack_gates(w_ih, E, 0).astype(jnp.bfloat16)                 # (E,  3Hp)
    w_h3 = pack_gates(w_hh, H, Hp - H).astype(jnp.bfloat16)            # (Hp, 3Hp)
    b_i3 = pack_gate_bias(b_ih).astype(jnp.float32)                    # (1,  3Hp)
    b_h3 = pack_gate_bias(b_hh).astype(jnp.float32)                    # (1,  3Hp)
    wa1 = jnp.pad(Wa1.T, ((0, Hp - H), (0, Hp - H))).astype(jnp.bfloat16)
    wa2 = jnp.pad(Wa2.T, ((0, Hp - H), (0, Hp - H))).astype(jnp.bfloat16)
    wv = jnp.pad(Wv, ((0, 0), (0, Hp - H))).astype(jnp.float32)        # (1, Hp)
    wbc = jnp.pad(Wb[:H], ((0, Hp - H), (0, 0))).astype(jnp.bfloat16)  # (Hp, E)
    wbh = jnp.pad(Wb[H:], ((0, Hp - H), (0, 0))).astype(jnp.bfloat16)  # (Hp, E)

    tmp = pl.pallas_call(
        narm_gru_attn_kernel,
        out_shape=jax.ShapeDtypeStruct((B_pad, E), jnp.bfloat16),
        grid=(B_pad // B_tile,),
        in_specs=[
            pl.BlockSpec((T, B_tile, E), lambda b: (0, b, 0)),
            pl.BlockSpec((B_tile, 1), lambda b: (b, 0)),
            pl.BlockSpec((E, 3 * Hp), lambda b: (0, 0)),
            pl.BlockSpec((Hp, 3 * Hp), lambda b: (0, 0)),
            pl.BlockSpec((1, 3 * Hp), lambda b: (0, 0)),
            pl.BlockSpec((1, 3 * Hp), lambda b: (0, 0)),
            pl.BlockSpec((Hp, Hp), lambda b: (0, 0)),
            pl.BlockSpec((Hp, Hp), lambda b: (0, 0)),
            pl.BlockSpec((1, Hp), lambda b: (0, 0)),
            pl.BlockSpec((Hp, E), lambda b: (0, 0)),
            pl.BlockSpec((Hp, E), lambda b: (0, 0)),
        ],
        out_specs=pl.BlockSpec((B_tile, E), lambda b: (b, 0)),
        scratch_shapes=[pltpu.VMEM((T, B_tile, Hp), jnp.float32)],
        compiler_params=pltpu.CompilerParams(dimension_semantics=("parallel",)),
    )(embs_tbe, len_col, w_i3, w_h3, b_i3, b_h3, wa1, wa2, wv, wbc, wbh)

    # ---- scores: stream the pre-quantized item table, lane-dense int8 tiles ---
    if item_table is None:
        item_table = prepare_item_table(W_emb, item_tile=item_tile)
    items_q, scale_row, TN = item_table
    n_pad = items_q.shape[1]
    n_steps = n_pad // TN

    items_spec = pl.BlockSpec((E, TN), lambda i, j: (0, j))
    if n_steps >= 4:
        # deeper multi-buffering to hide residual DMA behind the small matmul
        items_spec = pl.BlockSpec((E, TN), lambda i, j: (0, j),
                                  pipeline_mode=pl.Buffered(3))

    scores = pl.pallas_call(
        narm_scores_kernel,
        out_shape=jax.ShapeDtypeStruct((B_pad, n_pad), jnp.float32),
        grid=(B_pad // B_tile, n_steps),
        in_specs=[
            pl.BlockSpec((B_tile, E), lambda i, j: (i, 0)),
            items_spec,
            pl.BlockSpec((1, TN), lambda i, j: (0, j)),
        ],
        out_specs=pl.BlockSpec((B_tile, TN), lambda i, j: (i, j)),
        compiler_params=pltpu.CompilerParams(
            dimension_semantics=("parallel", "parallel"),
            vmem_limit_bytes=64 * 1024 * 1024),
    )(tmp, items_q, scale_row)

    return scores[:B, :n_items_p1]


# ---------------------------------------------------------------------------
# Pure-JAX reference (mirrors the PyTorch module in eval mode, full f32)
# ---------------------------------------------------------------------------
def narm_reference(seq, lengths, params):
    del lengths
    W_emb, w_ih, w_hh, b_ih, b_hh, Wa1, Wa2, Wv, Wb = params
    B, T = seq.shape
    H = Wa1.shape[0]
    embs = jnp.take(W_emb, seq, axis=0)
    h = jnp.zeros((B, H), jnp.float32)
    outs = []
    for t in range(T):
        x = embs[:, t, :]
        gx = x @ w_ih.T + b_ih
        gh = h @ w_hh.T + b_hh
        r = jax.nn.sigmoid(gx[:, :H] + gh[:, :H])
        z = jax.nn.sigmoid(gx[:, H:2 * H] + gh[:, H:2 * H])
        n = jnp.tanh(gx[:, 2 * H:] + r * gh[:, 2 * H:])
        hn = (1.0 - z) * n + z * h
        m = (seq[:, t] > 0).astype(jnp.float32)[:, None]
        outs.append(m * hn)
        h = m * hn + (1.0 - m) * h
    gru_out = jnp.stack(outs, axis=1)                  # (B, T, H)
    ht = h
    q1 = gru_out @ Wa1.T
    q2 = ht @ Wa2.T
    mask = (seq > 0).astype(jnp.float32)
    act = jax.nn.sigmoid(q1 + mask[:, :, None] * q2[:, None, :])
    alpha = act @ Wv.T                                 # (B, T, 1)
    c_local = jnp.sum(alpha * gru_out, axis=1)
    c_t = jnp.concatenate([c_local, ht], axis=1)
    scores = c_t @ (W_emb @ Wb.T).T
    return scores


if __name__ == "__main__":
    # small, module-consistent sizes
    n_items, E, H = 50, 32, 32
    B, T = 2, 8

    key = jax.random.PRNGKey(0)
    ks = jax.random.split(key, 12)

    # deterministic "checkpoint" (PyTorch weight layouts)
    W_emb = 0.1 * jax.random.normal(ks[0], (n_items + 1, E), jnp.float32)
    W_emb = W_emb.at[0].set(0.0)                                     # padding_idx=0
    w_ih = 0.1 * jax.random.normal(ks[1], (3 * H, E), jnp.float32)   # GRU weight_ih_l0 (r,z,n)
    w_hh = 0.1 * jax.random.normal(ks[2], (3 * H, H), jnp.float32)   # GRU weight_hh_l0
    b_ih = 0.1 * jax.random.normal(ks[3], (3 * H,), jnp.float32)
    b_hh = 0.1 * jax.random.normal(ks[4], (3 * H,), jnp.float32)
    Wa1 = 0.1 * jax.random.normal(ks[5], (H, H), jnp.float32)        # a_1.weight
    Wa2 = 0.1 * jax.random.normal(ks[6], (H, H), jnp.float32)        # a_2.weight
    Wv = 0.1 * jax.random.normal(ks[7], (1, H), jnp.float32)         # v_t.weight
    Wb = 0.1 * jax.random.normal(ks[8], (2 * H, E), jnp.float32)     # b.weight
    params = (W_emb, w_ih, w_hh, b_ih, b_hh, Wa1, Wa2, Wv, Wb)

    # sequences: sorted-by-length-descending, 0-padded (pack_padded_sequence convention)
    lengths = jnp.array([T, 5], dtype=jnp.int32)
    seq = jax.random.randint(ks[9], (B, T), 1, n_items + 1, dtype=jnp.int32)
    pos = jnp.arange(T)[None, :]
    seq = jnp.where(pos < lengths[:, None], seq, 0)

    # one-time item-table prep (cache this across calls in a serving loop)
    item_table = prepare_item_table(W_emb)

    scores = jax.block_until_ready(narm_forward(seq, lengths, params, item_table))
    ref = jax.block_until_ready(narm_reference(seq, lengths, params))

    assert scores.shape == (B, n_items + 1)
    # tolerances account for bf16 matmul operands in the GRU/attention, the bf16
    # tmp handoff and the int8 per-row-scaled item table (f32 accumulation everywhere)
    np.testing.assert_allclose(np.asarray(scores), np.asarray(ref),
                               rtol=2e-2, atol=1e-2)
    print("KERNEL_OK")
</pallas_src>

<mosaic_0001>
module attributes {stable_mosaic.version = 11 : i64} {
  func.func @narm_gru_attn_kernel(%arg0: i32, %arg1: memref<8x8x32xbf16, #tpu.memory_space<vmem>>, %arg2: memref<8x1xi32, #tpu.memory_space<vmem>>, %arg3: memref<32x384xbf16, #tpu.memory_space<vmem>>, %arg4: memref<128x384xbf16, #tpu.memory_space<vmem>>, %arg5: memref<1x384xf32, #tpu.memory_space<vmem>>, %arg6: memref<1x384xf32, #tpu.memory_space<vmem>>, %arg7: memref<128x128xbf16, #tpu.memory_space<vmem>>, %arg8: memref<128x128xbf16, #tpu.memory_space<vmem>>, %arg9: memref<1x128xf32, #tpu.memory_space<vmem>>, %arg10: memref<128x32xbf16, #tpu.memory_space<vmem>>, %arg11: memref<128x32xbf16, #tpu.memory_space<vmem>>, %arg12: memref<8x32xbf16, #tpu.memory_space<vmem>>, %arg13: memref<8x8x128xf32, #tpu.memory_space<vmem>>) attributes {dimension_semantics = [#tpu.dimension_semantics<parallel>], iteration_bounds = array<i64: 1>, scalar_prefetch = 0 : i64, scratch_operands = 1 : i64, tpu.core_type = #tpu.core_type<tc>, window_params = [{transform_indices = @transform_0, window_bounds = array<i64: 8, 8, 32>}, {transform_indices = @transform_1, window_bounds = array<i64: 8, 1>}, {pipeline_mode = #tpu.pipeline_mode<synchronous>, transform_indices = @transform_2, window_bounds = array<i64: 32, 384>}, {pipeline_mode = #tpu.pipeline_mode<synchronous>, transform_indices = @transform_3, window_bounds = array<i64: 128, 384>}, {pipeline_mode = #tpu.pipeline_mode<synchronous>, transform_indices = @transform_4, window_bounds = array<i64: 1, 384>}, {pipeline_mode = #tpu.pipeline_mode<synchronous>, transform_indices = @transform_5, window_bounds = array<i64: 1, 384>}, {pipeline_mode = #tpu.pipeline_mode<synchronous>, transform_indices = @transform_6, window_bounds = array<i64: 128, 128>}, {pipeline_mode = #tpu.pipeline_mode<synchronous>, transform_indices = @transform_7, window_bounds = array<i64: 128, 128>}, {pipeline_mode = #tpu.pipeline_mode<synchronous>, transform_indices = @transform_8, window_bounds = array<i64: 1, 128>}, {pipeline_mode = #tpu.pipeline_mode<synchronous>, transform_indices = @transform_9, window_bounds = array<i64: 128, 32>}, {pipeline_mode = #tpu.pipeline_mode<synchronous>, transform_indices = @transform_10, window_bounds = array<i64: 128, 32>}, {transform_indices = @transform_11, window_bounds = array<i64: 8, 32>}]} {
    %c0 = arith.constant 0 : index
    %c0_0 = arith.constant 0 : index
    %0 = vector.load %arg3[%c0, %c0_0] : memref<32x384xbf16, #tpu.memory_space<vmem>>, vector<32x384xbf16>
    %c0_1 = arith.constant 0 : index
    %c0_2 = arith.constant 0 : index
    %1 = vector.load %arg4[%c0_1, %c0_2] : memref<128x384xbf16, #tpu.memory_space<vmem>>, vector<128x384xbf16>
    %c0_3 = arith.constant 0 : index
    %c0_4 = arith.constant 0 : index
    %2 = vector.load %arg5[%c0_3, %c0_4] : memref<1x384xf32, #tpu.memory_space<vmem>>, vector<1x384xf32>
    %c0_5 = arith.constant 0 : index
    %c0_6 = arith.constant 0 : index
    %3 = vector.load %arg6[%c0_5, %c0_6] : memref<1x384xf32, #tpu.memory_space<vmem>>, vector<1x384xf32>
    %c0_7 = arith.constant 0 : index
    %c0_8 = arith.constant 0 : index
    %4 = vector.load %arg2[%c0_7, %c0_8] : memref<8x1xi32, #tpu.memory_space<vmem>>, vector<8x1xi32>
    %cst = arith.constant 0.000000e+00 : f32
    %5 = vector.broadcast %cst : f32 to vector<8x128xf32>
    %c0_i32 = arith.constant 0 : i32
    %6 = arith.index_cast %c0_i32 : i32 to index
    %c0_9 = arith.constant 0 : index
    %c0_10 = arith.constant 0 : index
    %7 = vector.load %arg1[%6, %c0_9, %c0_10] : memref<8x8x32xbf16, #tpu.memory_space<vmem>>, vector<1x8x32xbf16>
    %8 = vector.shape_cast %7 : vector<1x8x32xbf16> to vector<8x32xbf16>
    %9 = vector.broadcast %c0_i32 : i32 to vector<8x1xi32>
    %10 = arith.cmpi sgt, %4, %9 : vector<8x1xi32>
    %11 = arith.extui %10 : vector<8x1xi1> to vector<8x1xi32>
    %12 = arith.sitofp %11 : vector<8x1xi32> to vector<8x1xf32>
    %cst_11 = arith.constant dense<0.000000e+00> : vector<8x384xf32>
    %13 = tpu.matmul %8, %0, %cst_11 {dimension_numbers = #tpu.dot_dimension_numbers<[1], [0], [0], [1], [0, 0, 1, 1], [], []>} : vector<8x32xbf16>, vector<32x384xbf16>, vector<8x384xf32> -> vector<8x384xf32>
    %14 = vector.broadcast %2 : vector<1x384xf32> to vector<8x384xf32>
    %15 = arith.addf %13, %14 : vector<8x384xf32>
    %16 = arith.truncf %5 : vector<8x128xf32> to vector<8x128xbf16>
    %cst_12 = arith.constant dense<0.000000e+00> : vector<8x384xf32>
    %17 = tpu.matmul %16, %1, %cst_12 {dimension_numbers = #tpu.dot_dimension_numbers<[1], [0], [0], [1], [0, 0, 1, 1], [], []>} : vector<8x128xbf16>, vector<128x384xbf16>, vector<8x384xf32> -> vector<8x384xf32>
    %18 = vector.broadcast %3 : vector<1x384xf32> to vector<8x384xf32>
    %19 = arith.addf %17, %18 : vector<8x384xf32>
    %20 = vector.extract_strided_slice %15 {offsets = [0, 0], sizes = [8, 128], strides = [1, 1]} : vector<8x384xf32> to vector<8x128xf32>
    %21 = vector.extract_strided_slice %19 {offsets = [0, 0], sizes = [8, 128], strides = [1, 1]} : vector<8x384xf32> to vector<8x128xf32>
    %22 = arith.addf %20, %21 : vector<8x128xf32>
    %23 = arith.negf %22 : vector<8x128xf32>
    %24 = math.exp %23 : vector<8x128xf32>
    %cst_13 = arith.constant 1.000000e+00 : f32
    %25 = vector.broadcast %cst_13 : f32 to vector<8x128xf32>
    %26 = arith.addf %25, %24 : vector<8x128xf32>
    %27 = arith.divf %25, %26 : vector<8x128xf32>
    %28 = vector.extract_strided_slice %15 {offsets = [0, 128], sizes = [8, 128], strides = [1, 1]} : vector<8x384xf32> to vector<8x128xf32>
    %29 = vector.extract_strided_slice %19 {offsets = [0, 128], sizes = [8, 128], strides = [1, 1]} : vector<8x384xf32> to vector<8x128xf32>
    %30 = arith.addf %28, %29 : vector<8x128xf32>
    %31 = arith.negf %30 : vector<8x128xf32>
    %32 = math.exp %31 : vector<8x128xf32>
    %cst_14 = arith.constant 1.000000e+00 : f32
    %33 = vector.broadcast %cst_14 : f32 to vector<8x128xf32>
    %34 = arith.addf %33, %32 : vector<8x128xf32>
    %35 = arith.divf %33, %34 : vector<8x128xf32>
    %36 = vector.extract_strided_slice %15 {offsets = [0, 256], sizes = [8, 128], strides = [1, 1]} : vector<8x384xf32> to vector<8x128xf32>
    %37 = vector.extract_strided_slice %19 {offsets = [0, 256], sizes = [8, 128], strides = [1, 1]} : vector<8x384xf32> to vector<8x128xf32>
    %38 = arith.mulf %27, %37 : vector<8x128xf32>
    %39 = arith.addf %36, %38 : vector<8x128xf32>
    %40 = math.tanh %39 : vector<8x128xf32>
    %cst_15 = arith.constant 1.000000e+00 : f32
    %41 = vector.broadcast %cst_15 : f32 to vector<8x128xf32>
    %42 = arith.subf %41, %35 : vector<8x128xf32>
    %43 = arith.mulf %42, %40 : vector<8x128xf32>
    %44 = arith.mulf %35, %5 : vector<8x128xf32>
    %45 = arith.addf %43, %44 : vector<8x128xf32>
    %46 = vector.broadcast %12 : vector<8x1xf32> to vector<8x128xf32>
    %47 = arith.mulf %46, %45 : vector<8x128xf32>
    %48 = arith.index_cast %c0_i32 : i32 to index
    %c0_16 = arith.constant 0 : index
    %c0_17 = arith.constant 0 : index
    %49 = vector.load %arg13[%48, %c0_16, %c0_17] : memref<8x8x128xf32, #tpu.memory_space<vmem>>, vector<1x8x128xf32>
    %50 = vector.shape_cast %49 : vector<1x8x128xf32> to vector<8x128xf32>
    %51 = vector.shape_cast %47 : vector<8x128xf32> to vector<1x8x128xf32>
    tpu.vector_store %arg13[%48, %c0_16, %c0_17], %51 {strides = array<i32>} : memref<8x8x128xf32, #tpu.memory_space<vmem>>, vector<1x8x128xf32>,
    %cst_18 = arith.constant 1.000000e+00 : f32
    %52 = vector.broadcast %cst_18 : f32 to vector<8x1xf32>
    %53 = arith.subf %52, %12 : vector<8x1xf32>
    %54 = vector.broadcast %53 : vector<8x1xf32> to vector<8x128xf32>
    %55 = arith.mulf %54, %5 : vector<8x128xf32>
    %56 = arith.addf %47, %55 : vector<8x128xf32>
    %c1_i32 = arith.constant 1 : i32
    %57 = arith.index_cast %c1_i32 : i32 to index
    %c0_19 = arith.constant 0 : index
    %c0_20 = arith.constant 0 : index
    %58 = vector.load %arg1[%57, %c0_19, %c0_20] : memref<8x8x32xbf16, #tpu.memory_space<vmem>>, vector<1x8x32xbf16>
    %59 = vector.shape_cast %58 : vector<1x8x32xbf16> to vector<8x32xbf16>
    %60 = vector.broadcast %c1_i32 : i32 to vector<8x1xi32>
    %61 = arith.cmpi sgt, %4, %60 : vector<8x1xi32>
    %62 = arith.extui %61 : vector<8x1xi1> to vector<8x1xi32>
    %63 = arith.sitofp %62 : vector<8x1xi32> to vector<8x1xf32>
    %cst_21 = arith.constant dense<0.000000e+00> : vector<8x384xf32>
    %64 = tpu.matmul %59, %0, %cst_21 {dimension_numbers = #tpu.dot_dimension_numbers<[1], [0], [0], [1], [0, 0, 1, 1], [], []>} : vector<8x32xbf16>, vector<32x384xbf16>, vector<8x384xf32> -> vector<8x384xf32>
    %65 = vector.broadcast %2 : vector<1x384xf32> to vector<8x384xf32>
    %66 = arith.addf %64, %65 : vector<8x384xf32>
    %67 = arith.truncf %56 : vector<8x128xf32> to vector<8x128xbf16>
    %cst_22 = arith.constant dense<0.000000e+00> : vector<8x384xf32>
    %68 = tpu.matmul %67, %1, %cst_22 {dimension_numbers = #tpu.dot_dimension_numbers<[1], [0], [0], [1], [0, 0, 1, 1], [], []>} : vector<8x128xbf16>, vector<128x384xbf16>, vector<8x384xf32> -> vector<8x384xf32>
    %69 = vector.broadcast %3 : vector<1x384xf32> to vector<8x384xf32>
    %70 = arith.addf %68, %69 : vector<8x384xf32>
    %71 = vector.extract_strided_slice %66 {offsets = [0, 0], sizes = [8, 128], strides = [1, 1]} : vector<8x384xf32> to vector<8x128xf32>
    %72 = vector.extract_strided_slice %70 {offsets = [0, 0], sizes = [8, 128], strides = [1, 1]} : vector<8x384xf32> to vector<8x128xf32>
    %73 = arith.addf %71, %72 : vector<8x128xf32>
    %74 = arith.negf %73 : vector<8x128xf32>
    %75 = math.exp %74 : vector<8x128xf32>
    %cst_23 = arith.constant 1.000000e+00 : f32
    %76 = vector.broadcast %cst_23 : f32 to vector<8x128xf32>
    %77 = arith.addf %76, %75 : vector<8x128xf32>
    %78 = arith.divf %76, %77 : vector<8x128xf32>
    %79 = vector.extract_strided_slice %66 {offsets = [0, 128], sizes = [8, 128], strides = [1, 1]} : vector<8x384xf32> to vector<8x128xf32>
    %80 = vector.extract_strided_slice %70 {offsets = [0, 128], sizes = [8, 128], strides = [1, 1]} : vector<8x384xf32> to vector<8x128xf32>
    %81 = arith.addf %79, %80 : vector<8x128xf32>
    %82 = arith.negf %81 : vector<8x128xf32>
    %83 = math.exp %82 : vector<8x128xf32>
    %cst_24 = arith.constant 1.000000e+00 : f32
    %84 = vector.broadcast %cst_24 : f32 to vector<8x128xf32>
    %85 = arith.addf %84, %83 : vector<8x128xf32>
    %86 = arith.divf %84, %85 : vector<8x128xf32>
    %87 = vector.extract_strided_slice %66 {offsets = [0, 256], sizes = [8, 128], strides = [1, 1]} : vector<8x384xf32> to vector<8x128xf32>
    %88 = vector.extract_strided_slice %70 {offsets = [0, 256], sizes = [8, 128], strides = [1, 1]} : vector<8x384xf32> to vector<8x128xf32>
    %89 = arith.mulf %78, %88 : vector<8x128xf32>
    %90 = arith.addf %87, %89 : vector<8x128xf32>
    %91 = math.tanh %90 : vector<8x128xf32>
    %cst_25 = arith.constant 1.000000e+00 : f32
    %92 = vector.broadcast %cst_25 : f32 to vector<8x128xf32>
    %93 = arith.subf %92, %86 : vector<8x128xf32>
    %94 = arith.mulf %93, %91 : vector<8x128xf32>
    %95 = arith.mulf %86, %56 : vector<8x128xf32>
    %96 = arith.addf %94, %95 : vector<8x128xf32>
    %97 = vector.broadcast %63 : vector<8x1xf32> to vector<8x128xf32>
    %98 = arith.mulf %97, %96 : vector<8x128xf32>
    %99 = arith.index_cast %c1_i32 : i32 to index
    %c0_26 = arith.constant 0 : index
    %c0_27 = arith.constant 0 : index
    %100 = vector.load %arg13[%99, %c0_26, %c0_27] : memref<8x8x128xf32, #tpu.memory_space<vmem>>, vector<1x8x128xf32>
    %101 = vector.shape_cast %100 : vector<1x8x128xf32> to vector<8x128xf32>
    %102 = vector.shape_cast %98 : vector<8x128xf32> to vector<1x8x128xf32>
    tpu.vector_store %arg13[%99, %c0_26, %c0_27], %102 {strides = array<i32>} : memref<8x8x128xf32, #tpu.memory_space<vmem>>, vector<1x8x128xf32>,
    %cst_28 = arith.constant 1.000000e+00 : f32
    %103 = vector.broadcast %cst_28 : f32 to vector<8x1xf32>
    %104 = arith.subf %103, %63 : vector<8x1xf32>
    %105 = vector.broadcast %104 : vector<8x1xf32> to vector<8x128xf32>
    %106 = arith.mulf %105, %56 : vector<8x128xf32>
    %107 = arith.addf %98, %106 : vector<8x128xf32>
    %c2_i32 = arith.constant 2 : i32
    %108 = arith.index_cast %c2_i32 : i32 to index
    %c0_29 = arith.constant 0 : index
    %c0_30 = arith.constant 0 : index
    %109 = vector.load %arg1[%108, %c0_29, %c0_30] : memref<8x8x32xbf16, #tpu.memory_space<vmem>>, vector<1x8x32xbf16>
    %110 = vector.shape_cast %109 : vector<1x8x32xbf16> to vector<8x32xbf16>
    %111 = vector.broadcast %c2_i32 : i32 to vector<8x1xi32>
    %112 = arith.cmpi sgt, %4, %111 : vector<8x1xi32>
    %113 = arith.extui %112 : vector<8x1xi1> to vector<8x1xi32>
    %114 = arith.sitofp %113 : vector<8x1xi32> to vector<8x1xf32>
    %cst_31 = arith.constant dense<0.000000e+00> : vector<8x384xf32>
    %115 = tpu.matmul %110, %0, %cst_31 {dimension_numbers = #tpu.dot_dimension_numbers<[1], [0], [0], [1], [0, 0, 1, 1], [], []>} : vector<8x32xbf16>, vector<32x384xbf16>, vector<8x384xf32> -> vector<8x384xf32>
    %116 = vector.broadcast %2 : vector<1x384xf32> to vector<8x384xf32>
    %117 = arith.addf %115, %116 : vector<8x384xf32>
    %118 = arith.truncf %107 : vector<8x128xf32> to vector<8x128xbf16>
    %cst_32 = arith.constant dense<0.000000e+00> : vector<8x384xf32>
    %119 = tpu.matmul %118, %1, %cst_32 {dimension_numbers = #tpu.dot_dimension_numbers<[1], [0], [0], [1], [0, 0, 1, 1], [], []>} : vector<8x128xbf16>, vector<128x384xbf16>, vector<8x384xf32> -> vector<8x384xf32>
    %120 = vector.broadcast %3 : vector<1x384xf32> to vector<8x384xf32>
    %121 = arith.addf %119, %120 : vector<8x384xf32>
    %122 = vector.extract_strided_slice %117 {offsets = [0, 0], sizes = [8, 128], strides = [1, 1]} : vector<8x384xf32> to vector<8x128xf32>
    %123 = vector.extract_strided_slice %121 {offsets = [0, 0], sizes = [8, 128], strides = [1, 1]} : vector<8x384xf32> to vector<8x128xf32>
    %124 = arith.addf %122, %123 : vector<8x128xf32>
    %125 = arith.negf %124 : vector<8x128xf32>
    %126 = math.exp %125 : vector<8x128xf32>
    %cst_33 = arith.constant 1.000000e+00 : f32
    %127 = vector.broadcast %cst_33 : f32 to vector<8x128xf32>
    %128 = arith.addf %127, %126 : vector<8x128xf32>
    %129 = arith.divf %127, %128 : vector<8x128xf32>
    %130 = vector.extract_strided_slice %117 {offsets = [0, 128], sizes = [8, 128], strides = [1, 1]} : vector<8x384xf32> to vector<8x128xf32>
    %131 = vector.extract_strided_slice %121 {offsets = [0, 128], sizes = [8, 128], strides = [1, 1]} : vector<8x384xf32> to vector<8x128xf32>
    %132 = arith.addf %130, %131 : vector<8x128xf32>
    %133 = arith.negf %132 : vector<8x128xf32>
    %134 = math.exp %133 : vector<8x128xf32>
    %cst_34 = arith.constant 1.000000e+00 : f32
    %135 = vector.broadcast %cst_34 : f32 to vector<8x128xf32>
    %136 = arith.addf %135, %134 : vector<8x128xf32>
    %137 = arith.divf %135, %136 : vector<8x128xf32>
    %138 = vector.extract_strided_slice %117 {offsets = [0, 256], sizes = [8, 128], strides = [1, 1]} : vector<8x384xf32> to vector<8x128xf32>
    %139 = vector.extract_strided_slice %121 {offsets = [0, 256], sizes = [8, 128], strides = [1, 1]} : vector<8x384xf32> to vector<8x128xf32>
    %140 = arith.mulf %129, %139 : vector<8x128xf32>
    %141 = arith.addf %138, %140 : vector<8x128xf32>
    %142 = math.tanh %141 : vector<8x128xf32>
    %cst_35 = arith.constant 1.000000e+00 : f32
    %143 = vector.broadcast %cst_35 : f32 to vector<8x128xf32>
    %144 = arith.subf %143, %137 : vector<8x128xf32>
    %145 = arith.mulf %144, %142 : vector<8x128xf32>
    %146 = arith.mulf %137, %107 : vector<8x128xf32>
    %147 = arith.addf %145, %146 : vector<8x128xf32>
    %148 = vector.broadcast %114 : vector<8x1xf32> to vector<8x128xf32>
    %149 = arith.mulf %148, %147 : vector<8x128xf32>
    %150 = arith.index_cast %c2_i32 : i32 to index
    %c0_36 = arith.constant 0 : index
    %c0_37 = arith.constant 0 : index
    %151 = vector.load %arg13[%150, %c0_36, %c0_37] : memref<8x8x128xf32, #tpu.memory_space<vmem>>, vector<1x8x128xf32>
    %152 = vector.shape_cast %151 : vector<1x8x128xf32> to vector<8x128xf32>
    %153 = vector.shape_cast %149 : vector<8x128xf32> to vector<1x8x128xf32>
    tpu.vector_store %arg13[%150, %c0_36, %c0_37], %153 {strides = array<i32>} : memref<8x8x128xf32, #tpu.memory_space<vmem>>, vector<1x8x128xf32>,
    %cst_38 = arith.constant 1.000000e+00 : f32
    %154 = vector.broadcast %cst_38 : f32 to vector<8x1xf32>
    %155 = arith.subf %154, %114 : vector<8x1xf32>
    %156 = vector.broadcast %155 : vector<8x1xf32> to vector<8x128xf32>
    %157 = arith.mulf %156, %107 : vector<8x128xf32>
    %158 = arith.addf %149, %157 : vector<8x128xf32>
    %c3_i32 = arith.constant 3 : i32
    %159 = arith.index_cast %c3_i32 : i32 to index
    %c0_39 = arith.constant 0 : index
    %c0_40 = arith.constant 0 : index
    %160 = vector.load %arg1[%159, %c0_39, %c0_40] : memref<8x8x32xbf16, #tpu.memory_space<vmem>>, vector<1x8x32xbf16>
    %161 = vector.shape_cast %160 : vector<1x8x32xbf16> to vector<8x32xbf16>
    %162 = vector.broadcast %c3_i32 : i32 to vector<8x1xi32>
    %163 = arith.cmpi sgt, %4, %162 : vector<8x1xi32>
    %164 = arith.extui %163 : vector<8x1xi1> to vector<8x1xi32>
    %165 = arith.sitofp %164 : vector<8x1xi32> to vector<8x1xf32>
    %cst_41 = arith.constant dense<0.000000e+00> : vector<8x384xf32>
    %166 = tpu.matmul %161, %0, %cst_41 {dimension_numbers = #tpu.dot_dimension_numbers<[1], [0], [0], [1], [0, 0, 1, 1], [], []>} : vector<8x32xbf16>, vector<32x384xbf16>, vector<8x384xf32> -> vector<8x384xf32>
    %167 = vector.broadcast %2 : vector<1x384xf32> to vector<8x384xf32>
    %168 = arith.addf %166, %167 : vector<8x384xf32>
    %169 = arith.truncf %158 : vector<8x128xf32> to vector<8x128xbf16>
    %cst_42 = arith.constant dense<0.000000e+00> : vector<8x384xf32>
    %170 = tpu.matmul %169, %1, %cst_42 {dimension_numbers = #tpu.dot_dimension_numbers<[1], [0], [0], [1], [0, 0, 1, 1], [], []>} : vector<8x128xbf16>, vector<128x384xbf16>, vector<8x384xf32> -> vector<8x384xf32>
    %171 = vector.broadcast %3 : vector<1x384xf32> to vector<8x384xf32>
    %172 = arith.addf %170, %171 : vector<8x384xf32>
    %173 = vector.extract_strided_slice %168 {offsets = [0, 0], sizes = [8, 128], strides = [1, 1]} : vector<8x384xf32> to vector<8x128xf32>
    %174 = vector.extract_strided_slice %172 {offsets = [0, 0], sizes = [8, 128], strides = [1, 1]} : vector<8x384xf32> to vector<8x128xf32>
    %175 = arith.addf %173, %174 : vector<8x128xf32>
    %176 = arith.negf %175 : vector<8x128xf32>
    %177 = math.exp %176 : vector<8x128xf32>
    %cst_43 = arith.constant 1.000000e+00 : f32
    %178 = vector.broadcast %cst_43 : f32 to vector<8x128xf32>
    %179 = arith.addf %178, %177 : vector<8x128xf32>
    %180 = arith.divf %178, %179 : vector<8x128xf32>
    %181 = vector.extract_strided_slice %168 {offsets = [0, 128], sizes = [8, 128], strides = [1, 1]} : vector<8x384xf32> to vector<8x128xf32>
    %182 = vector.extract_strided_slice %172 {offsets = [0, 128], sizes = [8, 128], strides = [1, 1]} : vector<8x384xf32> to vector<8x128xf32>
    %183 = arith.addf %181, %182 : vector<8x128xf32>
    %184 = arith.negf %183 : vector<8x128xf32>
    %185 = math.exp %184 : vector<8x128xf32>
    %cst_44 = arith.constant 1.000000e+00 : f32
    %186 = vector.broadcast %cst_44 : f32 to vector<8x128xf32>
    %187 = arith.addf %186, %185 : vector<8x128xf32>
    %188 = arith.divf %186, %187 : vector<8x128xf32>
    %189 = vector.extract_strided_slice %168 {offsets = [0, 256], sizes = [8, 128], strides = [1, 1]} : vector<8x384xf32> to vector<8x128xf32>
    %190 = vector.extract_strided_slice %172 {offsets = [0, 256], sizes = [8, 128], strides = [1, 1]} : vector<8x384xf32> to vector<8x128xf32>
    %191 = arith.mulf %180, %190 : vector<8x128xf32>
    %192 = arith.addf %189, %191 : vector<8x128xf32>
    %193 = math.tanh %192 : vector<8x128xf32>
    %cst_45 = arith.constant 1.000000e+00 : f32
    %194 = vector.broadcast %cst_45 : f32 to vector<8x128xf32>
    %195 = arith.subf %194, %188 : vector<8x128xf32>
    %196 = arith.mulf %195, %193 : vector<8x128xf32>
    %197 = arith.mulf %188, %158 : vector<8x128xf32>
    %198 = arith.addf %196, %197 : vector<8x128xf32>
    %199 = vector.broadcast %165 : vector<8x1xf32> to vector<8x128xf32>
    %200 = arith.mulf %199, %198 : vector<8x128xf32>
    %201 = arith.index_cast %c3_i32 : i32 to index
    %c0_46 = arith.constant 0 : index
    %c0_47 = arith.constant 0 : index
    %202 = vector.load %arg13[%201, %c0_46, %c0_47] : memref<8x8x128xf32, #tpu.memory_space<vmem>>, vector<1x8x128xf32>
    %203 = vector.shape_cast %202 : vector<1x8x128xf32> to vector<8x128xf32>
    %204 = vector.shape_cast %200 : vector<8x128xf32> to vector<1x8x128xf32>
    tpu.vector_store %arg13[%201, %c0_46, %c0_47], %204 {strides = array<i32>} : memref<8x8x128xf32, #tpu.memory_space<vmem>>, vector<1x8x128xf32>,
    %cst_48 = arith.constant 1.000000e+00 : f32
    %205 = vector.broadcast %cst_48 : f32 to vector<8x1xf32>
    %206 = arith.subf %205, %165 : vector<8x1xf32>
    %207 = vector.broadcast %206 : vector<8x1xf32> to vector<8x128xf32>
    %208 = arith.mulf %207, %158 : vector<8x128xf32>
    %209 = arith.addf %200, %208 : vector<8x128xf32>
    %c4_i32 = arith.constant 4 : i32
    %210 = arith.index_cast %c4_i32 : i32 to index
    %c0_49 = arith.constant 0 : index
    %c0_50 = arith.constant 0 : index
    %211 = vector.load %arg1[%210, %c0_49, %c0_50] : memref<8x8x32xbf16, #tpu.memory_space<vmem>>, vector<1x8x32xbf16>
    %212 = vector.shape_cast %211 : vector<1x8x32xbf16> to vector<8x32xbf16>
    %213 = vector.broadcast %c4_i32 : i32 to vector<8x1xi32>
    %214 = arith.cmpi sgt, %4, %213 : vector<8x1xi32>
    %215 = arith.extui %214 : vector<8x1xi1> to vector<8x1xi32>
    %216 = arith.sitofp %215 : vector<8x1xi32> to vector<8x1xf32>
    %cst_51 = arith.constant dense<0.000000e+00> : vector<8x384xf32>
    %217 = tpu.matmul %212, %0, %cst_51 {dimension_numbers = #tpu.dot_dimension_numbers<[1], [0], [0], [1], [0, 0, 1, 1], [], []>} : vector<8x32xbf16>, vector<32x384xbf16>, vector<8x384xf32> -> vector<8x384xf32>
    %218 = vector.broadcast %2 : vector<1x384xf32> to vector<8x384xf32>
    %219 = arith.addf %217, %218 : vector<8x384xf32>
    %220 = arith.truncf %209 : vector<8x128xf32> to vector<8x128xbf16>
    %cst_52 = arith.constant dense<0.000000e+00> : vector<8x384xf32>
    %221 = tpu.matmul %220, %1, %cst_52 {dimension_numbers = #tpu.dot_dimension_numbers<[1], [0], [0], [1], [0, 0, 1, 1], [], []>} : vector<8x128xbf16>, vector<128x384xbf16>, vector<8x384xf32> -> vector<8x384xf32>
    %222 = vector.broadcast %3 : vector<1x384xf32> to vector<8x384xf32>
    %223 = arith.addf %221, %222 : vector<8x384xf32>
    %224 = vector.extract_strided_slice %219 {offsets = [0, 0], sizes = [8, 128], strides = [1, 1]} : vector<8x384xf32> to vector<8x128xf32>
    %225 = vector.extract_strided_slice %223 {offsets = [0, 0], sizes = [8, 128], strides = [1, 1]} : vector<8x384xf32> to vector<8x128xf32>
    %226 = arith.addf %224, %225 : vector<8x128xf32>
    %227 = arith.negf %226 : vector<8x128xf32>
    %228 = math.exp %227 : vector<8x128xf32>
    %cst_53 = arith.constant 1.000000e+00 : f32
    %229 = vector.broadcast %cst_53 : f32 to vector<8x128xf32>
    %230 = arith.addf %229, %228 : vector<8x128xf32>
    %231 = arith.divf %229, %230 : vector<8x128xf32>
    %232 = vector.extract_strided_slice %219 {offsets = [0, 128], sizes = [8, 128], strides = [1, 1]} : vector<8x384xf32> to vector<8x128xf32>
    %233 = vector.extract_strided_slice %223 {offsets = [0, 128], sizes = [8, 128], strides = [1, 1]} : vector<8x384xf32> to vector<8x128xf32>
    %234 = arith.addf %232, %233 : vector<8x128xf32>
    %235 = arith.negf %234 : vector<8x128xf32>
    %236 = math.exp %235 : vector<8x128xf32>
    %cst_54 = arith.constant 1.000000e+00 : f32
    %237 = vector.broadcast %cst_54 : f32 to vector<8x128xf32>
    %238 = arith.addf %237, %236 : vector<8x128xf32>
    %239 = arith.divf %237, %238 : vector<8x128xf32>
    %240 = vector.extract_strided_slice %219 {offsets = [0, 256], sizes = [8, 128], strides = [1, 1]} : vector<8x384xf32> to vector<8x128xf32>
    %241 = vector.extract_strided_slice %223 {offsets = [0, 256], sizes = [8, 128], strides = [1, 1]} : vector<8x384xf32> to vector<8x128xf32>
    %242 = arith.mulf %231, %241 : vector<8x128xf32>
    %243 = arith.addf %240, %242 : vector<8x128xf32>
    %244 = math.tanh %243 : vector<8x128xf32>
    %cst_55 = arith.constant 1.000000e+00 : f32
    %245 = vector.broadcast %cst_55 : f32 to vector<8x128xf32>
    %246 = arith.subf %245, %239 : vector<8x128xf32>
    %247 = arith.mulf %246, %244 : vector<8x128xf32>
    %248 = arith.mulf %239, %209 : vector<8x128xf32>
    %249 = arith.addf %247, %248 : vector<8x128xf32>
    %250 = vector.broadcast %216 : vector<8x1xf32> to vector<8x128xf32>
    %251 = arith.mulf %250, %249 : vector<8x128xf32>
    %252 = arith.index_cast %c4_i32 : i32 to index
    %c0_56 = arith.constant 0 : index
    %c0_57 = arith.constant 0 : index
    %253 = vector.load %arg13[%252, %c0_56, %c0_57] : memref<8x8x128xf32, #tpu.memory_space<vmem>>, vector<1x8x128xf32>
    %254 = vector.shape_cast %253 : vector<1x8x128xf32> to vector<8x128xf32>
    %255 = vector.shape_cast %251 : vector<8x128xf32> to vector<1x8x128xf32>
    tpu.vector_store %arg13[%252, %c0_56, %c0_57], %255 {strides = array<i32>} : memref<8x8x128xf32, #tpu.memory_space<vmem>>, vector<1x8x128xf32>,
    %cst_58 = arith.constant 1.000000e+00 : f32
    %256 = vector.broadcast %cst_58 : f32 to vector<8x1xf32>
    %257 = arith.subf %256, %216 : vector<8x1xf32>
    %258 = vector.broadcast %257 : vector<8x1xf32> to vector<8x128xf32>
    %259 = arith.mulf %258, %209 : vector<8x128xf32>
    %260 = arith.addf %251, %259 : vector<8x128xf32>
    %c5_i32 = arith.constant 5 : i32
    %261 = arith.index_cast %c5_i32 : i32 to index
    %c0_59 = arith.constant 0 : index
    %c0_60 = arith.constant 0 : index
    %262 = vector.load %arg1[%261, %c0_59, %c0_60] : memref<8x8x32xbf16, #tpu.memory_space<vmem>>, vector<1x8x32xbf16>
    %263 = vector.shape_cast %262 : vector<1x8x32xbf16> to vector<8x32xbf16>
    %264 = vector.broadcast %c5_i32 : i32 to vector<8x1xi32>
    %265 = arith.cmpi sgt, %4, %264 : vector<8x1xi32>
    %266 = arith.extui %265 : vector<8x1xi1> to vector<8x1xi32>
    %267 = arith.sitofp %266 : vector<8x1xi32> to vector<8x1xf32>
    %cst_61 = arith.constant dense<0.000000e+00> : vector<8x384xf32>
    %268 = tpu.matmul %263, %0, %cst_61 {dimension_numbers = #tpu.dot_dimension_numbers<[1], [0], [0], [1], [0, 0, 1, 1], [], []>} : vector<8x32xbf16>, vector<32x384xbf16>, vector<8x384xf32> -> vector<8x384xf32>
    %269 = vector.broadcast %2 : vector<1x384xf32> to vector<8x384xf32>
    %270 = arith.addf %268, %269 : vector<8x384xf32>
    %271 = arith.truncf %260 : vector<8x128xf32> to vector<8x128xbf16>
    %cst_62 = arith.constant dense<0.000000e+00> : vector<8x384xf32>
    %272 = tpu.matmul %271, %1, %cst_62 {dimension_numbers = #tpu.dot_dimension_numbers<[1], [0], [0], [1], [0, 0, 1, 1], [], []>} : vector<8x128xbf16>, vector<128x384xbf16>, vector<8x384xf32> -> vector<8x384xf32>
    %273 = vector.broadcast %3 : vector<1x384xf32> to vector<8x384xf32>
    %274 = arith.addf %272, %273 : vector<8x384xf32>
    %275 = vector.extract_strided_slice %270 {offsets = [0, 0], sizes = [8, 128], strides = [1, 1]} : vector<8x384xf32> to vector<8x128xf32>
    %276 = vector.extract_strided_slice %274 {offsets = [0, 0], sizes = [8, 128], strides = [1, 1]} : vector<8x384xf32> to vector<8x128xf32>
    %277 = arith.addf %275, %276 : vector<8x128xf32>
    %278 = arith.negf %277 : vector<8x128xf32>
    %279 = math.exp %278 : vector<8x128xf32>
    %cst_63 = arith.constant 1.000000e+00 : f32
    %280 = vector.broadcast %cst_63 : f32 to vector<8x128xf32>
    %281 = arith.addf %280, %279 : vector<8x128xf32>
    %282 = arith.divf %280, %281 : vector<8x128xf32>
    %283 = vector.extract_strided_slice %270 {offsets = [0, 128], sizes = [8, 128], strides = [1, 1]} : vector<8x384xf32> to vector<8x128xf32>
    %284 = vector.extract_strided_slice %274 {offsets = [0, 128], sizes = [8, 128], strides = [1, 1]} : vector<8x384xf32> to vector<8x128xf32>
    %285 = arith.addf %283, %284 : vector<8x128xf32>
    %286 = arith.negf %285 : vector<8x128xf32>
    %287 = math.exp %286 : vector<8x128xf32>
    %cst_64 = arith.constant 1.000000e+00 : f32
    %288 = vector.broadcast %cst_64 : f32 to vector<8x128xf32>
    %289 = arith.addf %288, %287 : vector<8x128xf32>
    %290 = arith.divf %288, %289 : vector<8x128xf32>
    %291 = vector.extract_strided_slice %270 {offsets = [0, 256], sizes = [8, 128], strides = [1, 1]} : vector<8x384xf32> to vector<8x128xf32>
    %292 = vector.extract_strided_slice %274 {offsets = [0, 256], sizes = [8, 128], strides = [1, 1]} : vector<8x384xf32> to vector<8x128xf32>
    %293 = arith.mulf %282, %292 : vector<8x128xf32>
    %294 = arith.addf %291, %293 : vector<8x128xf32>
    %295 = math.tanh %294 : vector<8x128xf32>
    %cst_65 = arith.constant 1.000000e+00 : f32
    %296 = vector.broadcast %cst_65 : f32 to vector<8x128xf32>
    %297 = arith.subf %296, %290 : vector<8x128xf32>
    %298 = arith.mulf %297, %295 : vector<8x128xf32>
    %299 = arith.mulf %290, %260 : vector<8x128xf32>
    %300 = arith.addf %298, %299 : vector<8x128xf32>
    %301 = vector.broadcast %267 : vector<8x1xf32> to vector<8x128xf32>
    %302 = arith.mulf %301, %300 : vector<8x128xf32>
    %303 = arith.index_cast %c5_i32 : i32 to index
    %c0_66 = arith.constant 0 : index
    %c0_67 = arith.constant 0 : index
    %304 = vector.load %arg13[%303, %c0_66, %c0_67] : memref<8x8x128xf32, #tpu.memory_space<vmem>>, vector<1x8x128xf32>
    %305 = vector.shape_cast %304 : vector<1x8x128xf32> to vector<8x128xf32>
    %306 = vector.shape_cast %302 : vector<8x128xf32> to vector<1x8x128xf32>
    tpu.vector_store %arg13[%303, %c0_66, %c0_67], %306 {strides = array<i32>} : memref<8x8x128xf32, #tpu.memory_space<vmem>>, vector<1x8x128xf32>,
    %cst_68 = arith.constant 1.000000e+00 : f32
    %307 = vector.broadcast %cst_68 : f32 to vector<8x1xf32>
    %308 = arith.subf %307, %267 : vector<8x1xf32>
    %309 = vector.broadcast %308 : vector<8x1xf32> to vector<8x128xf32>
    %310 = arith.mulf %309, %260 : vector<8x128xf32>
    %311 = arith.addf %302, %310 : vector<8x128xf32>
    %c6_i32 = arith.constant 6 : i32
    %312 = arith.index_cast %c6_i32 : i32 to index
    %c0_69 = arith.constant 0 : index
    %c0_70 = arith.constant 0 : index
    %313 = vector.load %arg1[%312, %c0_69, %c0_70] : memref<8x8x32xbf16, #tpu.memory_space<vmem>>, vector<1x8x32xbf16>
    %314 = vector.shape_cast %313 : vector<1x8x32xbf16> to vector<8x32xbf16>
    %315 = vector.broadcast %c6_i32 : i32 to vector<8x1xi32>
    %316 = arith.cmpi sgt, %4, %315 : vector<8x1xi32>
    %317 = arith.extui %316 : vector<8x1xi1> to vector<8x1xi32>
    %318 = arith.sitofp %317 : vector<8x1xi32> to vector<8x1xf32>
    %cst_71 = arith.constant dense<0.000000e+00> : vector<8x384xf32>
    %319 = tpu.matmul %314, %0, %cst_71 {dimension_numbers = #tpu.dot_dimension_numbers<[1], [0], [0], [1], [0, 0, 1, 1], [], []>} : vector<8x32xbf16>, vector<32x384xbf16>, vector<8x384xf32> -> vector<8x384xf32>
    %320 = vector.broadcast %2 : vector<1x384xf32> to vector<8x384xf32>
    %321 = arith.addf %319, %320 : vector<8x384xf32>
    %322 = arith.truncf %311 : vector<8x128xf32> to vector<8x128xbf16>
    %cst_72 = arith.constant dense<0.000000e+00> : vector<8x384xf32>
    %323 = tpu.matmul %322, %1, %cst_72 {dimension_numbers = #tpu.dot_dimension_numbers<[1], [0], [0], [1], [0, 0, 1, 1], [], []>} : vector<8x128xbf16>, vector<128x384xbf16>, vector<8x384xf32> -> vector<8x384xf32>
    %324 = vector.broadcast %3 : vector<1x384xf32> to vector<8x384xf32>
    %325 = arith.addf %323, %324 : vector<8x384xf32>
    %326 = vector.extract_strided_slice %321 {offsets = [0, 0], sizes = [8, 128], strides = [1, 1]} : vector<8x384xf32> to vector<8x128xf32>
    %327 = vector.extract_strided_slice %325 {offsets = [0, 0], sizes = [8, 128], strides = [1, 1]} : vector<8x384xf32> to vector<8x128xf32>
    %328 = arith.addf %326, %327 : vector<8x128xf32>
    %329 = arith.negf %328 : vector<8x128xf32>
    %330 = math.exp %329 : vector<8x128xf32>
    %cst_73 = arith.constant 1.000000e+00 : f32
    %331 = vector.broadcast %cst_73 : f32 to vector<8x128xf32>
    %332 = arith.addf %331, %330 : vector<8x128xf32>
    %333 = arith.divf %331, %332 : vector<8x128xf32>
    %334 = vector.extract_strided_slice %321 {offsets = [0, 128], sizes = [8, 128], strides = [1, 1]} : vector<8x384xf32> to vector<8x128xf32>
    %335 = vector.extract_strided_slice %325 {offsets = [0, 128], sizes = [8, 128], strides = [1, 1]} : vector<8x384xf32> to vector<8x128xf32>
    %336 = arith.addf %334, %335 : vector<8x128xf32>
    %337 = arith.negf %336 : vector<8x128xf32>
    %338 = math.exp %337 : vector<8x128xf32>
    %cst_74 = arith.constant 1.000000e+00 : f32
    %339 = vector.broadcast %cst_74 : f32 to vector<8x128xf32>
    %340 = arith.addf %339, %338 : vector<8x128xf32>
    %341 = arith.divf %339, %340 : vector<8x128xf32>
    %342 = vector.extract_strided_slice %321 {offsets = [0, 256], sizes = [8, 128], strides = [1, 1]} : vector<8x384xf32> to vector<8x128xf32>
    %343 = vector.extract_strided_slice %325 {offsets = [0, 256], sizes = [8, 128], strides = [1, 1]} : vector<8x384xf32> to vector<8x128xf32>
    %344 = arith.mulf %333, %343 : vector<8x128xf32>
    %345 = arith.addf %342, %344 : vector<8x128xf32>
    %346 = math.tanh %345 : vector<8x128xf32>
    %cst_75 = arith.constant 1.000000e+00 : f32
    %347 = vector.broadcast %cst_75 : f32 to vector<8x128xf32>
    %348 = arith.subf %347, %341 : vector<8x128xf32>
    %349 = arith.mulf %348, %346 : vector<8x128xf32>
    %350 = arith.mulf %341, %311 : vector<8x128xf32>
    %351 = arith.addf %349, %350 : vector<8x128xf32>
    %352 = vector.broadcast %318 : vector<8x1xf32> to vector<8x128xf32>
    %353 = arith.mulf %352, %351 : vector<8x128xf32>
    %354 = arith.index_cast %c6_i32 : i32 to index
    %c0_76 = arith.constant 0 : index
    %c0_77 = arith.constant 0 : index
    %355 = vector.load %arg13[%354, %c0_76, %c0_77] : memref<8x8x128xf32, #tpu.memory_space<vmem>>, vector<1x8x128xf32>
    %356 = vector.shape_cast %355 : vector<1x8x128xf32> to vector<8x128xf32>
    %357 = vector.shape_cast %353 : vector<8x128xf32> to vector<1x8x128xf32>
    tpu.vector_store %arg13[%354, %c0_76, %c0_77], %357 {strides = array<i32>} : memref<8x8x128xf32, #tpu.memory_space<vmem>>, vector<1x8x128xf32>,
    %cst_78 = arith.constant 1.000000e+00 : f32
    %358 = vector.broadcast %cst_78 : f32 to vector<8x1xf32>
    %359 = arith.subf %358, %318 : vector<8x1xf32>
    %360 = vector.broadcast %359 : vector<8x1xf32> to vector<8x128xf32>
    %361 = arith.mulf %360, %311 : vector<8x128xf32>
    %362 = arith.addf %353, %361 : vector<8x128xf32>
    %c7_i32 = arith.constant 7 : i32
    %363 = arith.index_cast %c7_i32 : i32 to index
    %c0_79 = arith.constant 0 : index
    %c0_80 = arith.constant 0 : index
    %364 = vector.load %arg1[%363, %c0_79, %c0_80] : memref<8x8x32xbf16, #tpu.memory_space<vmem>>, vector<1x8x32xbf16>
    %365 = vector.shape_cast %364 : vector<1x8x32xbf16> to vector<8x32xbf16>
    %366 = vector.broadcast %c7_i32 : i32 to vector<8x1xi32>
    %367 = arith.cmpi sgt, %4, %366 : vector<8x1xi32>
    %368 = arith.extui %367 : vector<8x1xi1> to vector<8x1xi32>
    %369 = arith.sitofp %368 : vector<8x1xi32> to vector<8x1xf32>
    %cst_81 = arith.constant dense<0.000000e+00> : vector<8x384xf32>
    %370 = tpu.matmul %365, %0, %cst_81 {dimension_numbers = #tpu.dot_dimension_numbers<[1], [0], [0], [1], [0, 0, 1, 1], [], []>} : vector<8x32xbf16>, vector<32x384xbf16>, vector<8x384xf32> -> vector<8x384xf32>
    %371 = vector.broadcast %2 : vector<1x384xf32> to vector<8x384xf32>
    %372 = arith.addf %370, %371 : vector<8x384xf32>
    %373 = arith.truncf %362 : vector<8x128xf32> to vector<8x128xbf16>
    %cst_82 = arith.constant dense<0.000000e+00> : vector<8x384xf32>
    %374 = tpu.matmul %373, %1, %cst_82 {dimension_numbers = #tpu.dot_dimension_numbers<[1], [0], [0], [1], [0, 0, 1, 1], [], []>} : vector<8x128xbf16>, vector<128x384xbf16>, vector<8x384xf32> -> vector<8x384xf32>
    %375 = vector.broadcast %3 : vector<1x384xf32> to vector<8x384xf32>
    %376 = arith.addf %374, %375 : vector<8x384xf32>
    %377 = vector.extract_strided_slice %372 {offsets = [0, 0], sizes = [8, 128], strides = [1, 1]} : vector<8x384xf32> to vector<8x128xf32>
    %378 = vector.extract_strided_slice %376 {offsets = [0, 0], sizes = [8, 128], strides = [1, 1]} : vector<8x384xf32> to vector<8x128xf32>
    %379 = arith.addf %377, %378 : vector<8x128xf32>
    %380 = arith.negf %379 : vector<8x128xf32>
    %381 = math.exp %380 : vector<8x128xf32>
    %cst_83 = arith.constant 1.000000e+00 : f32
    %382 = vector.broadcast %cst_83 : f32 to vector<8x128xf32>
    %383 = arith.addf %382, %381 : vector<8x128xf32>
    %384 = arith.divf %382, %383 : vector<8x128xf32>
    %385 = vector.extract_strided_slice %372 {offsets = [0, 128], sizes = [8, 128], strides = [1, 1]} : vector<8x384xf32> to vector<8x128xf32>
    %386 = vector.extract_strided_slice %376 {offsets = [0, 128], sizes = [8, 128], strides = [1, 1]} : vector<8x384xf32> to vector<8x128xf32>
    %387 = arith.addf %385, %386 : vector<8x128xf32>
    %388 = arith.negf %387 : vector<8x128xf32>
    %389 = math.exp %388 : vector<8x128xf32>
    %cst_84 = arith.constant 1.000000e+00 : f32
    %390 = vector.broadcast %cst_84 : f32 to vector<8x128xf32>
    %391 = arith.addf %390, %389 : vector<8x128xf32>
    %392 = arith.divf %390, %391 : vector<8x128xf32>
    %393 = vector.extract_strided_slice %372 {offsets = [0, 256], sizes = [8, 128], strides = [1, 1]} : vector<8x384xf32> to vector<8x128xf32>
    %394 = vector.extract_strided_slice %376 {offsets = [0, 256], sizes = [8, 128], strides = [1, 1]} : vector<8x384xf32> to vector<8x128xf32>
    %395 = arith.mulf %384, %394 : vector<8x128xf32>
    %396 = arith.addf %393, %395 : vector<8x128xf32>
    %397 = math.tanh %396 : vector<8x128xf32>
    %cst_85 = arith.constant 1.000000e+00 : f32
    %398 = vector.broadcast %cst_85 : f32 to vector<8x128xf32>
    %399 = arith.subf %398, %392 : vector<8x128xf32>
    %400 = arith.mulf %399, %397 : vector<8x128xf32>
    %401 = arith.mulf %392, %362 : vector<8x128xf32>
    %402 = arith.addf %400, %401 : vector<8x128xf32>
    %403 = vector.broadcast %369 : vector<8x1xf32> to vector<8x128xf32>
    %404 = arith.mulf %403, %402 : vector<8x128xf32>
    %405 = arith.index_cast %c7_i32 : i32 to index
    %c0_86 = arith.constant 0 : index
    %c0_87 = arith.constant 0 : index
    %406 = vector.load %arg13[%405, %c0_86, %c0_87] : memref<8x8x128xf32, #tpu.memory_space<vmem>>, vector<1x8x128xf32>
    %407 = vector.shape_cast %406 : vector<1x8x128xf32> to vector<8x128xf32>
    %408 = vector.shape_cast %404 : vector<8x128xf32> to vector<1x8x128xf32>
    tpu.vector_store %arg13[%405, %c0_86, %c0_87], %408 {strides = array<i32>} : memref<8x8x128xf32, #tpu.memory_space<vmem>>, vector<1x8x128xf32>,
    %cst_88 = arith.constant 1.000000e+00 : f32
    %409 = vector.broadcast %cst_88 : f32 to vector<8x1xf32>
    %410 = arith.subf %409, %369 : vector<8x1xf32>
    %411 = vector.broadcast %410 : vector<8x1xf32> to vector<8x128xf32>
    %412 = arith.mulf %411, %362 : vector<8x128xf32>
    %413 = arith.addf %404, %412 : vector<8x128xf32>
    %c8_i32 = arith.constant 8 : i32
    %c0_89 = arith.constant 0 : index
    %c0_90 = arith.constant 0 : index
    %c0_91 = arith.constant 0 : index
    %414 = vector.load %arg13[%c0_89, %c0_90, %c0_91] : memref<8x8x128xf32, #tpu.memory_space<vmem>>, vector<8x8x128xf32>
    %415 = vector.shape_cast %414 : vector<8x8x128xf32> to vector<64x128xf32>
    %416 = arith.truncf %415 : vector<64x128xf32> to vector<64x128xbf16>
    %c0_92 = arith.constant 0 : index
    %c0_93 = arith.constant 0 : index
    %417 = vector.load %arg7[%c0_92, %c0_93] : memref<128x128xbf16, #tpu.memory_space<vmem>>, vector<128x128xbf16>
    %cst_94 = arith.constant dense<0.000000e+00> : vector<64x128xf32>
    %418 = tpu.matmul %416, %417, %cst_94 {dimension_numbers = #tpu.dot_dimension_numbers<[1], [0], [0], [1], [0, 0, 1, 1], [], []>} : vector<64x128xbf16>, vector<128x128xbf16>, vector<64x128xf32> -> vector<64x128xf32>
    %419 = vector.shape_cast %418 : vector<64x128xf32> to vector<8x8x128xf32>
    %420 = arith.truncf %413 : vector<8x128xf32> to vector<8x128xbf16>
    %c0_95 = arith.constant 0 : index
    %c0_96 = arith.constant 0 : index
    %421 = vector.load %arg8[%c0_95, %c0_96] : memref<128x128xbf16, #tpu.memory_space<vmem>>, vector<128x128xbf16>
    %cst_97 = arith.constant dense<0.000000e+00> : vector<8x128xf32>
    %422 = tpu.matmul %420, %421, %cst_97 {dimension_numbers = #tpu.dot_dimension_numbers<[1], [0], [0], [1], [0, 0, 1, 1], [], []>} : vector<8x128xbf16>, vector<128x128xbf16>, vector<8x128xf32> -> vector<8x128xf32>
    %423 = vector.shape_cast %422 : vector<8x128xf32> to vector<1x8x128xf32>
    %424 = vector.broadcast %423 : vector<1x8x128xf32> to vector<8x8x128xf32>
    %425 = arith.addf %419, %424 : vector<8x8x128xf32>
    %426 = arith.negf %425 : vector<8x8x128xf32>
    %427 = math.exp %426 : vector<8x8x128xf32>
    %cst_98 = arith.constant 1.000000e+00 : f32
    %428 = vector.broadcast %cst_98 : f32 to vector<8x8x128xf32>
    %429 = arith.addf %428, %427 : vector<8x8x128xf32>
    %430 = arith.divf %428, %429 : vector<8x8x128xf32>
    %c0_99 = arith.constant 0 : index
    %c0_100 = arith.constant 0 : index
    %431 = vector.load %arg9[%c0_99, %c0_100] : memref<1x128xf32, #tpu.memory_space<vmem>>, vector<1x128xf32>
    %432 = vector.shape_cast %431 : vector<1x128xf32> to vector<1x1x128xf32>
    %433 = vector.broadcast %432 : vector<1x1x128xf32> to vector<8x8x128xf32>
    %434 = arith.mulf %430, %433 : vector<8x8x128xf32>
    %cst_101 = arith.constant dense<0.000000e+00> : vector<8x8xf32>
    %435 = vector.multi_reduction <add>, %434, %cst_101 [2] : vector<8x8x128xf32> to vector<8x8xf32>
    %436 = vector.shape_cast %435 : vector<8x8xf32> to vector<8x8x1xf32>
    %437 = vector.broadcast %436 : vector<8x8x1xf32> to vector<8x8x128xf32>
    %438 = arith.mulf %437, %414 : vector<8x8x128xf32>
    %cst_102 = arith.constant dense<0.000000e+00> : vector<8x128xf32>
    %439 = vector.multi_reduction <add>, %438, %cst_102 [0] : vector<8x8x128xf32> to vector<8x128xf32>
    %440 = arith.truncf %439 : vector<8x128xf32> to vector<8x128xbf16>
    %c0_103 = arith.constant 0 : index
    %c0_104 = arith.constant 0 : index
    %441 = vector.load %arg10[%c0_103, %c0_104] : memref<128x32xbf16, #tpu.memory_space<vmem>>, vector<128x32xbf16>
    %cst_105 = arith.constant dense<0.000000e+00> : vector<8x32xf32>
    %442 = tpu.matmul %440, %441, %cst_105 {dimension_numbers = #tpu.dot_dimension_numbers<[1], [0], [0], [1], [0, 0, 1, 1], [], []>} : vector<8x128xbf16>, vector<128x32xbf16>, vector<8x32xf32> -> vector<8x32xf32>
    %443 = arith.truncf %413 : vector<8x128xf32> to vector<8x128xbf16>
    %c0_106 = arith.constant 0 : index
    %c0_107 = arith.constant 0 : index
    %444 = vector.load %arg11[%c0_106, %c0_107] : memref<128x32xbf16, #tpu.memory_space<vmem>>, vector<128x32xbf16>
    %cst_108 = arith.constant dense<0.000000e+00> : vector<8x32xf32>
    %445 = tpu.matmul %443, %444, %cst_108 {dimension_numbers = #tpu.dot_dimension_numbers<[1], [0], [0], [1], [0, 0, 1, 1], [], []>} : vector<8x128xbf16>, vector<128x32xbf16>, vector<8x32xf32> -> vector<8x32xf32>
    %446 = arith.addf %442, %445 : vector<8x32xf32>
    %447 = arith.truncf %446 : vector<8x32xf32> to vector<8x32xbf16>
    %c0_109 = arith.constant 0 : index
    %c0_110 = arith.constant 0 : index
    %448 = vector.load %arg12[%c0_109, %c0_110] : memref<8x32xbf16, #tpu.memory_space<vmem>>, vector<8x32xbf16>
    tpu.vector_store %arg12[%c0_109, %c0_110], %447 {strides = array<i32>} : memref<8x32xbf16, #tpu.memory_space<vmem>>, vector<8x32xbf16>,
    return
  }
  func.func @transform_0(%arg0: i32) -> (i32, i32, i32) {
    %c0_i32 = arith.constant 0 : i32
    %c0_i32_0 = arith.constant 0 : i32
    %c0_i32_1 = arith.constant 0 : i32
    return %c0_i32, %arg0, %c0_i32_0 : i32, i32, i32
  }
  func.func @transform_1(%arg0: i32) -> (i32, i32) {
    %c0_i32 = arith.constant 0 : i32
    %c0_i32_0 = arith.constant 0 : i32
    return %arg0, %c0_i32 : i32, i32
  }
  func.func @transform_2(%arg0: i32) -> (i32, i32) {
    %c0_i32 = arith.constant 0 : i32
    %c0_i32_0 = arith.constant 0 : i32
    %c0_i32_1 = arith.constant 0 : i32
    return %c0_i32, %c0_i32_0 : i32, i32
  }
  func.func @transform_3(%arg0: i32) -> (i32, i32) {
    %c0_i32 = arith.constant 0 : i32
    %c0_i32_0 = arith.constant 0 : i32
    %c0_i32_1 = arith.constant 0 : i32
    return %c0_i32, %c0_i32_0 : i32, i32
  }
  func.func @transform_4(%arg0: i32) -> (i32, i32) {
    %c0_i32 = arith.constant 0 : i32
    %c0_i32_0 = arith.constant 0 : i32
    %c0_i32_1 = arith.constant 0 : i32
    return %c0_i32, %c0_i32_0 : i32, i32
  }
  func.func @transform_5(%arg0: i32) -> (i32, i32) {
    %c0_i32 = arith.constant 0 : i32
    %c0_i32_0 = arith.constant 0 : i32
    %c0_i32_1 = arith.constant 0 : i32
    return %c0_i32, %c0_i32_0 : i32, i32
  }
  func.func @transform_6(%arg0: i32) -> (i32, i32) {
    %c0_i32 = arith.constant 0 : i32
    %c0_i32_0 = arith.constant 0 : i32
    %c0_i32_1 = arith.constant 0 : i32
    return %c0_i32, %c0_i32_0 : i32, i32
  }
  func.func @transform_7(%arg0: i32) -> (i32, i32) {
    %c0_i32 = arith.constant 0 : i32
    %c0_i32_0 = arith.constant 0 : i32
    %c0_i32_1 = arith.constant 0 : i32
    return %c0_i32, %c0_i32_0 : i32, i32
  }
  func.func @transform_8(%arg0: i32) -> (i32, i32) {
    %c0_i32 = arith.constant 0 : i32
    %c0_i32_0 = arith.constant 0 : i32
    %c0_i32_1 = arith.constant 0 : i32
    return %c0_i32, %c0_i32_0 : i32, i32
  }
  func.func @transform_9(%arg0: i32) -> (i32, i32) {
    %c0_i32 = arith.constant 0 : i32
    %c0_i32_0 = arith.constant 0 : i32
    %c0_i32_1 = arith.constant 0 : i32
    return %c0_i32, %c0_i32_0 : i32, i32
  }
  func.func @transform_10(%arg0: i32) -> (i32, i32) {
    %c0_i32 = arith.constant 0 : i32
    %c0_i32_0 = arith.constant 0 : i32
    %c0_i32_1 = arith.constant 0 : i32
    return %c0_i32, %c0_i32_0 : i32, i32
  }
  func.func @transform_11(%arg0: i32) -> (i32, i32) {
    %c0_i32 = arith.constant 0 : i32
    %c0_i32_0 = arith.constant 0 : i32
    return %arg0, %c0_i32 : i32, i32
  }
}

</mosaic_0001>

<bundles_post_ra>
// kernel: tpu_custom_call.1
= control target key start
LH: loop header
LB: loop body
LE: loop exit
PB: predicated region body
PF: predicated region fallthrough
CT: control target
= control target key end

     0   :  { %16 = vsyncpa [#allocation4], 0  ;;  %s4463_s0 = inlined_call_operand.hbm [shape: bf16[8,8,32], index: 0, kind: input, shape index: {}]   ;;  %s4464_s1 = inlined_call_operand.vmem [shape: s32[8,1], index: 1, kind: input, shape index: {}]   ;;  %s4465_s2 = inlined_call_operand.vmem [shape: bf16[32,384], index: 2, kind: input, shape index: {}]   ;;  %s4466_s3 = inlined_call_operand.hbm [shape: bf16[128,384], index: 3, kind: input, shape index: {}]   ;;  %s4467_s4 = inlined_call_operand.vmem [shape: f32[1,384], index: 4, kind: input, shape index: {}]   ;;  %s4468_s5 = inlined_call_operand.hbm [shape: f32[1,384], index: 5, kind: input, shape index: {}]   ;;  %s4469_s6 = inlined_call_operand.vmem [shape: bf16[128,128], index: 6, kind: input, shape index: {}]   ;;  %s4470_s7 = inlined_call_operand.vmem [shape: bf16[128,128], index: 7, kind: input, shape index: {}]   ;;  %s4471_s8 = inlined_call_operand.vmem [shape: f32[1,128], index: 8, kind: input, shape index: {}]   ;;  %s4472_s9 = inlined_call_operand.vmem [shape: bf16[128,32], index: 9, kind: input, shape index: {}]   ;;  %s4473_s10 = inlined_call_operand.vmem [shape: bf16[128,32], index: 10, kind: input, shape index: {}]   ;;  %s4474_s11 = inlined_call_operand.hbm [shape: bf16[8,32], index: 11, kind: output, shape index: {}]  }
   0x1   :  { %17 = vsyncpa [#allocation7], 0 }
   0x2   :  { %18 = vsyncpa [#allocation5], 0  ;;  %s3493_s17 = smov [#allocation6]   ;;  %s3399_s21 = scalar_lea.hbm %s4466_s3, 3072 }
   0x3   :  { %s40_s18 = sshll.u32 %s3493_s17, 4  ;;  %p3400_p0 = scmp.ne.s32.totalorder %s4466_s3, %s3399_s21  ;;  %s41_s18 = int_to_ptr.vmem [resolvable:$true] %s40_s18 }
   0x4   :  { %p3403_p1 = scmp.lt.u32.totalorder %s3399_s21, %s4466_s3 }
   0x6   :  { %p3405_p2 = pnand %p3403_p1, %p3400_p0 }
   0x8   :  { %3408 = shalt.err (!%p3405_p2)
}
   0x9   :  { %s3409_s26 = scalar_lea.vmem %s41_s18, 3072  ;;  %p3414_p4 = scmp.lt.s32.totalorder %s41_s18, %s41_s18 }
   0xa   :  { %p3410_p3 = scmp.ne.s32.totalorder %s41_s18, %s3409_s26  ;;  %p3415_p5 = scmp.lt.s32.totalorder %s3409_s26, %s3409_s26 }
   0xc   :  { %p3416_p6 = por %p3415_p5, %p3414_p4 }
   0xe   :  { %p3417_p7 = pnand %p3416_p6, %p3410_p3 }
  0x10   :  { %3420 = shalt.err (!%p3417_p7)
}
  0x11   :  { %s3494_s27 = smov 192   ;;  %s3495_s28 = smov 12  }
  0x12   :  { %46 = dma.hbm_to_vmem [thread:$0]  %s4466_s3, 3072, %s41_s18, [#allocation7], %s3494_s27, %s3494_s27, %s3495_s28  }
  0x13   :  { %s3496_s12 = smov [#allocation3]   ;;  %s3421_s16 = scalar_lea.hbm %s4463_s0, 512 }
  0x14   :  { %s24_s13 = sshll.u32 %s3496_s12, 4  ;;  %p3422_p8 = scmp.ne.s32.totalorder %s4463_s0, %s3421_s16  ;;  %s25_s13 = int_to_ptr.vmem [resolvable:$true] %s24_s13 }
  0x15   :  { %p3425_p9 = scmp.lt.u32.totalorder %s3421_s16, %s4463_s0 }
  0x17   :  { %p3427_p10 = pnand %p3425_p9, %p3422_p8 }
  0x19   :  { %3430 = shalt.err (!%p3427_p10)
}
  0x1a   :  { %s3431_s22 = scalar_lea.vmem %s25_s13, 512  ;;  %p3436_p12 = scmp.lt.s32.totalorder %s25_s13, %s25_s13 }
  0x1b   :  { %p3432_p11 = scmp.ne.s32.totalorder %s25_s13, %s3431_s22  ;;  %p3437_p13 = scmp.lt.s32.totalorder %s3431_s22, %s3431_s22 }
  0x1d   :  { %p3438_p0 = por %p3437_p13, %p3436_p12 }
  0x1f   :  { %p3439_p1 = pnand %p3438_p0, %p3432_p11 }
  0x21   :  { %3442 = shalt.err (!%p3439_p1)
}
  0x22   :  { %s3497_s3 = smov 64   ;;  %s3498_s18 = smov 4  }
  0x23   :  { %30 = dma.hbm_to_vmem [thread:$0]  %s4463_s0, 512, %s25_s13, [#allocation4], %s3497_s3, %s3497_s3, %s3498_s18  }
  0x24   :  { %s3499_s25 = smov [#allocation8]   ;;  %s3443_s29 = scalar_lea.hbm %s4468_s5, 48 }
  0x25   :  { %s55_s26 = sshll.u32 %s3499_s25, 4  ;;  %p3444_p2 = scmp.ne.s32.totalorder %s4468_s5, %s3443_s29  ;;  %s56_s26 = int_to_ptr.vmem [resolvable:$true] %s55_s26 }
  0x26   :  { %p3447_p3 = scmp.lt.u32.totalorder %s3443_s29, %s4468_s5 }
  0x28   :  { %p3449_p4 = pnand %p3447_p3, %p3444_p2 }
  0x2a   :  { %3452 = shalt.err (!%p3449_p4)
}
  0x2b   :  { %s3453_s16 = scalar_lea.vmem %s56_s26, 48  ;;  %s3457_s0 = scalar_lea.vmem %s56_s26, 64 }
  0x2c   :  { %p3454_p5 = scmp.ne.s32.totalorder %s56_s26, %s3453_s16  ;;  %p3458_p6 = scmp.lt.s32.totalorder %s56_s26, %s56_s26 }
  0x2d   :  { %p3459_p7 = scmp.lt.s32.totalorder %s3457_s0, %s3453_s16 }
  0x2f   :  { %p3460_p8 = por %p3459_p7, %p3458_p6 }
  0x31   :  { %p3461_p9 = pnand %p3460_p8, %p3454_p5 }
  0x33   :  { %3464 = shalt.err (!%p3461_p9)
}
  0x34   :  { %58 = dma.hbm_to_vmem [thread:$0]  %s4468_s5, 48, %s56_s26, [#allocation7]  }
  0x35   :  { %3487 = dma.done.wait [#allocation4], 512  }
  0x36   :  { %3488 = vsyncadd [#allocation4], 4294966784 }
  0x37   :  { %3489 = dma.done.wait [#allocation7], 3120  }
  0x38   :  { %3490 = vsyncadd [#allocation7], 4294964176  ;;  %v3500_v0 = vmov 0.0   ;;  %vm3501_vm0 = vmmov 0   ;;  %v3502_v1 = vmov 0   ;;  %vm174_vm1 = vcmask 261120  }
  0x39   :  { %2798 = vmatprep.subr.bf16.mxu1 %v3500_v0  ;;  %2802 = vmatprep.mubr.msk.bf16.mxu1 %vm3501_vm0, %v3500_v0  ;;  %v3609_v2 = vld [vmem:[%s4465_s2 + $0x8] ss:$12 sps:$4 sm:$0xff]   ;;  %v3615_v3 = vld [vmem:[%s4465_s2 + $0x20] ss:$12 sps:$4 sm:$0xff]   ;;  %v3618_v4 = vld [vmem:[#allocation6 + $0x4] ss:$12 sps:$4 sm:$0xff]   ;;  %v127_v55 = vlaneseq }
  0x3a   :  { %210 = vmatprep.mubr.bf16.mxu0 %v3502_v1  ;;  %3183 = vset.pattern.permute.xlu0 %v3502_v1  ;;  %v122_v5 = vld [vmem:[#allocation3] sm:$0xf]  ;;  %v3624_v7 = vld [vmem:[#allocation6 + $0x1c] ss:$12 sps:$4 sm:$0xff]   ;;  %v3630_v8 = vld [vmem:[%s4465_s2 + $0x4] ss:$12 sps:$4 sm:$0xff]  }
  0x3b   :  { %3184 = vset.pattern.permute.xlu1 %v3502_v1  ;;  %2799 = vmatpush3.bf16.msra.mxu1 %v3609_v2  ;;  %v3621_v6 = vld [vmem:[#allocation6] ss:$12 sps:$4 sm:$0xff]   ;;  %v3633_v9 = vld [vmem:[#allocation6 + $0x18] ss:$12 sps:$4 sm:$0xff]   ;;  %v3648_v12 = vld [vmem:[%s4465_s2 + $0x1c] ss:$12 sps:$4 sm:$0xff]  }
  0x3c   :  { %2800 = vmatprep.subr.bf16.mxu1 %v3500_v0  ;;  %v3637_v10 = vld [vmem:[#allocation6 + $0x34] ss:$12 sps:$4 sm:$0xff]   ;;  %178 = vmatprep.subr.bf16.mxu0 %v3630_v8  ;;  %v3654_v13 = vld [vmem:[%s4465_s2 + $0x18] ss:$12 sps:$4 sm:$0xff]   ;;  %v3657_v14 = vld [vmem:[#allocation6 + $0x30] ss:$12 sps:$4 sm:$0xff]  }
  0x3d   :  { %v3643_v11 = vld [vmem:[%s4465_s2] ss:$12 sps:$4 sm:$0xff]   ;;  %v3665_v16 = vld [vmem:[#allocation6 + $0x48] ss:$12 sps:$4 sm:$0xff]   ;;  %v3669_v17 = vld [vmem:[#allocation6 + $0x64] ss:$12 sps:$4 sm:$0xff]  }
  0x3e   :  { %179 = vmatpush1.bf16.msra.mxu0 %v3643_v11  ;;  %v3661_v15 = vld [vmem:[#allocation6 + $0x4c] ss:$12 sps:$4 sm:$0xff]   ;;  %v3679_v19 = vld [vmem:[#allocation6 + $0x7c] ss:$12 sps:$4 sm:$0xff]   ;;  %v3684_v20 = vld [vmem:[%s4464_s1] sm:$0xff]  ;;  %v128_v60 = vshrl.u32 %v127_v55, 7 }
  0x3f   :  { %2801 = vmatpush3.bf16.msra.mxu1 %v3615_v3  ;;  %180 = vmatprep.subr.bf16.mxu0 %v3648_v12  ;;  %v3675_v18 = vld [vmem:[#allocation6 + $0x60] ss:$12 sps:$4 sm:$0xff]   ;;  %v3686_v21 = vld [vmem:[#allocation6 + $0x78] ss:$12 sps:$4 sm:$0xff]   ;;  %vm123_vm2 = vcmp.gt.s32.totalorder %v3684_v20, 0  ;;  %vm730_vm3 = vcmp.gt.s32.totalorder %v3684_v20, 2 }
  0x40   :  { %403 = vmatprep.subr.bf16.mxu1 %v3618_v4  ;;  %vm938_vm4 = vcmp.gt.s32.totalorder %v3684_v20, 3  ;;  %vm1146_vm5 = vcmp.gt.s32.totalorder %v3684_v20, 4  ;;  %v3692_v22 = vld [vmem:[#allocation6 + $0x94] ss:$12 sps:$4 sm:$0xff]   ;;  %v2552_v23 = vsel %vm123_vm2, 1.0, %v3500_v0  ;;  %v2592_v25 = vsel %vm730_vm3, 1.0, %v3500_v0 }
  0x41   :  { %507 = vperm.xlu0 %3183, %v2552_v23   ;;  %v512_v24 = vsub.f32 1.0, %v2552_v23  ;;  %v2597_v26 = vsel %vm938_vm4, 1.0, %v3500_v0  ;;  %v2602_v27 = vsel %vm1146_vm5, 1.0, %v3500_v0  ;;  %vm1354_vm6 = vcmp.gt.s32.totalorder %v3684_v20, 5  ;;  %v3705_v28 = vld [vmem:[#allocation6 + $0x90] ss:$12 sps:$4 sm:$0xff]  }
  0x42   :  { %2803 = vmatmul.mubr.msk.bf16.vlgmr.msra.gmra.mrb[0].mxu1 %vm174_vm1, %v122_v5  ;;  %181 = vmatpush1.bf16.msra.mxu0 %v3654_v13  ;;  %vm1562_vm7 = vcmp.gt.s32.totalorder %v3684_v20, 6  ;;  %vm522_vm8 = vcmp.gt.s32.totalorder %v3684_v20, 1  ;;  %v928_v29 = vsub.f32 1.0, %v2592_v25  ;;  %v1136_v30 = vsub.f32 1.0, %v2597_v26  ;;  %v3709_v33 = vld [vmem:[#allocation6 + $0xac] ss:$12 sps:$4 sm:$0xff]  }
  0x43   :  { %404 = vmatpush1.bf16.msra.mxu1 %v3621_v6  ;;  %435 = vmatprep.mubr.bf16.mxu1 %v3502_v1  ;;  %v2607_v31 = vsel %vm1354_vm6, 1.0, %v3500_v0  ;;  %v2587_v32 = vsel %vm522_vm8, 1.0, %v3500_v0  ;;  %v1344_v34 = vsub.f32 1.0, %v2602_v27  ;;  %v2612_v36 = vsel %vm1562_vm7, 1.0, %v3500_v0  ;;  %v3714_v38 = vld [vmem:[#allocation6 + $0xa8] ss:$12 sps:$4 sm:$0xff]  }
  0x44   :  { %405 = vmatprep.subr.bf16.mxu1 %v3624_v7  ;;  %528 = vmatprep.subr.bf16.mxu0 %v3630_v8  ;;  %v1552_v35 = vsub.f32 1.0, %v2607_v31  ;;  %v720_v37 = vsub.f32 1.0, %v2587_v32  ;;  %v3718_v39 = vld [vmem:[#allocation6 + $0x8] ss:$12 sps:$4 sm:$0xff]   ;;  %v3722_v40 = vld [vmem:[#allocation6 + $0x20] ss:$12 sps:$4 sm:$0xff]  }
  0x45   :  { %2559 = vmatmul.mubr.msk.bf16.vlgmr.msra.gmra.mrb[0].mxu0 %vm174_vm1, %v122_v5  ;;  %714 = vperm.xlu1 %3184, %v2587_v32   ;;  %v3729_v41 = vld [vmem:[#allocation6 + $0x38] ss:$12 sps:$4 sm:$0xff]   ;;  %v1760_v42 = vsub.f32 1.0, %v2612_v36  ;;  %vm1770_vm9 = vcmp.gt.s32.totalorder %v3684_v20, 7  ;;  %v3735_v43 = vld [vmem:[#allocation6 + $0x50] ss:$12 sps:$4 sm:$0xff]  }
  0x46   :  { %529 = vmatpush1.bf16.msra.mxu0 %v3643_v11  ;;  %560 = vmatprep.mubr.bf16.mxu0 %v3502_v1  ;;  %v2617_v44 = vsel %vm1770_vm9, 1.0, %v3500_v0  ;;  %v3740_v46 = vld [vmem:[#allocation6 + $0x68] ss:$12 sps:$4 sm:$0xff]   ;;  %v3744_v47 = vld [vmem:[#allocation6 + $0x80] ss:$12 sps:$4 sm:$0xff]   ;;  %v129_v61 = vsub.s32 0, %v128_v60 }
  0x47   :  { %406 = vmatpush1.bf16.msra.mxu1 %v3633_v9  ;;  %530 = vmatprep.subr.bf16.mxu0 %v3648_v12  ;;  %v1968_v45 = vsub.f32 1.0, %v2617_v44  ;;  %v3748_v48 = vld [vmem:[#allocation6 + $0x98] ss:$12 sps:$4 sm:$0xff]   ;;  %v3752_v49 = vld [vmem:[#allocation6 + $0xb0] ss:$12 sps:$4 sm:$0xff]   ;;  %v133_v62 = vsub.s32 1, %v128_v60 }
  0x48   :  { %407 = vmatprep.subr.bf16.mxu1 %v3637_v10  ;;  %515 = vperm.xlu0 %3183, %v512_v24   ;;  %v521_v50 = vld [vmem:[#allocation3 + $0x4] sm:$0xf]  ;;  %v119_v63 = vld [vmem:[%s4467_s4] sm:$0x7]  ;;  %vm2534_vm10 = vcmask 257024  }
  0x49   :  { %723 = vperm.xlu1 %3184, %v720_v37   ;;  %v3804_v5 = vrot.slane %v119_v63, %v129_v61  ;;  %v120_v20 = vld [vmem:[#allocation8] sm:$0x7]  ;;  %v3806_v23 = vrot.slane %v119_v63, %v133_v62 }
  0x4a   :  { %531 = vmatpush1.bf16.msra.mxu0 %v3654_v13 }
  0x4b   :  { %408 = vmatpush1.bf16.msra.mxu1 %v3657_v14  ;;  %610 = vmatprep.subr.bf16.mxu0 %v3618_v4 }
  0x4c   :  { %409 = vmatprep.subr.bf16.mxu1 %v3661_v15  ;;  %922 = vperm.xlu0 %3183, %v2592_v25   ;;  %v3809_v25 = vrot.slane %v120_v20, %v129_v61 }
  0x4d   :  { %931 = vperm.xlu1 %3184, %v928_v29   ;;  %2588 = vmatmul.mubr.msk.bf16.vlgmr.msra.gmra.mrb[4].mxu0 %vm174_vm1, %v521_v50 }
  0x4e   :  { %611 = vmatpush1.bf16.msra.mxu0 %v3621_v6  ;;  %642 = vmatprep.mubr.bf16.mxu0 %v3502_v1 }
  0x4f   :  { %410 = vmatpush1.bf16.msra.mxu1 %v3665_v16  ;;  %612 = vmatprep.subr.bf16.mxu0 %v3624_v7 }
  0x50   :  { %411 = vmatprep.subr.bf16.mxu1 %v3669_v17  ;;  %1130 = vperm.xlu0 %3183, %v2597_v26  }
  0x51   :  { %1139 = vperm.xlu1 %3184, %v1136_v30  }
  0x52   :  { %613 = vmatpush1.bf16.msra.mxu0 %v3633_v9 }
  0x53   :  { %412 = vmatpush1.bf16.msra.mxu1 %v3675_v18  ;;  %614 = vmatprep.subr.bf16.mxu0 %v3637_v10 }
  0x54   :  { %413 = vmatprep.subr.bf16.mxu1 %v3679_v19  ;;  %1338 = vperm.xlu0 %3183, %v2602_v27   ;;  %v3812_v27 = vrot.slane %v120_v20, %v133_v62 }
  0x55   :  { %1347 = vperm.xlu1 %3184, %v1344_v34  }
  0x56   :  { %615 = vmatpush1.bf16.msra.mxu0 %v3657_v14 }
  0x57   :  { %414 = vmatpush1.bf16.msra.mxu1 %v3686_v21  ;;  %616 = vmatprep.subr.bf16.mxu0 %v3661_v15 }
  0x58   :  { %415 = vmatprep.subr.bf16.mxu1 %v3692_v22  ;;  %1546 = vperm.xlu0 %3183, %v2607_v31  }
  0x59   :  { %1555 = vperm.xlu1 %3184, %v1552_v35  }
  0x5a   :  { %617 = vmatpush1.bf16.msra.mxu0 %v3665_v16 }
  0x5b   :  { %416 = vmatpush1.bf16.msra.mxu1 %v3705_v28  ;;  %618 = vmatprep.subr.bf16.mxu0 %v3669_v17 }
  0x5c   :  { %417 = vmatprep.subr.bf16.mxu1 %v3709_v33  ;;  %1754 = vperm.xlu0 %3183, %v2612_v36  }
  0x5d   :  { %1763 = vperm.xlu1 %3184, %v1760_v42  }
  0x5e   :  { %619 = vmatpush1.bf16.msra.mxu0 %v3675_v18 }
  0x5f   :  { %418 = vmatpush1.bf16.msra.mxu1 %v3714_v38  ;;  %620 = vmatprep.subr.bf16.mxu0 %v3679_v19 }
  0x60   :  { %2806 = vmatprep.subr.bf16.mxu1 %v3500_v0  ;;  %1962 = vperm.xlu0 %3183, %v2617_v44  }
  0x61   :  { %1971 = vperm.xlu1 %3184, %v1968_v45  }
  0x62   :  { %436 = vmatmul.mubr.bf16.vlgmr.msra.gmra.mrb[4].mxu1 %v3502_v1  ;;  %621 = vmatpush1.bf16.msra.mxu0 %v3686_v21 }
  0x63   :  { %2807 = vmatpush3.bf16.msra.mxu1 %v3718_v39  ;;  %2822 = vmatprep.mubr.msk.bf16.mxu1 %vm3501_vm0, %v3500_v0 }
  0x64   :  { %2808 = vmatprep.subr.bf16.mxu1 %v3500_v0  ;;  %622 = vmatprep.subr.bf16.mxu0 %v3692_v22 }
  0x66   :  { %623 = vmatpush1.bf16.msra.mxu0 %v3705_v28 }
  0x67   :  { %2809 = vmatpush3.bf16.msra.mxu1 %v3722_v40  ;;  %624 = vmatprep.subr.bf16.mxu0 %v3709_v33 }
  0x68   :  { %2810 = vmatprep.subr.bf16.mxu1 %v3500_v0 }
  0x6a   :  { %625 = vmatpush1.bf16.msra.mxu0 %v3714_v38 }
  0x6b   :  { %2811 = vmatpush3.bf16.msra.mxu1 %v3729_v41  ;;  %736 = vmatprep.subr.bf16.mxu0 %v3630_v8 }
  0x6c   :  { %2812 = vmatprep.subr.bf16.mxu1 %v3500_v0 }
  0x6f   :  { %2813 = vmatpush3.bf16.msra.mxu1 %v3735_v43 }
  0x70   :  { %2814 = vmatprep.subr.bf16.mxu1 %v3500_v0 }
  0x73   :  { %2815 = vmatpush3.bf16.msra.mxu1 %v3740_v46 }
  0x74   :  { %2816 = vmatprep.subr.bf16.mxu1 %v3500_v0 }
  0x77   :  { %2817 = vmatpush3.bf16.msra.mxu1 %v3744_v47 }
  0x78   :  { %2818 = vmatprep.subr.bf16.mxu1 %v3500_v0 }
  0x7b   :  { %2819 = vmatpush3.bf16.msra.mxu1 %v3748_v48 }
  0x7c   :  { %2820 = vmatprep.subr.bf16.mxu1 %v3500_v0 }
  0x7f   :  { %2821 = vmatpush3.bf16.msra.mxu1 %v3752_v49 }
  0x80   :  { %2826 = vmatprep.subr.bf16.mxu1 %v3500_v0 }
  0x82   :  { %2823 = vmatmul.mubr.bf16.vlgmr.msra.gmra.mrb[8].mxu1 %v3502_v1 }
  0x83   :  { %2827 = vmatpush3.bf16.msra.mxu1 %v3609_v2  ;;  %2830 = vmatprep.mubr.msk.bf16.mxu1 %vm3501_vm0, %v3500_v0 }
  0x84   :  { %2828 = vmatprep.subr.bf16.mxu1 %v3500_v0 }
  0x87   :  { %2829 = vmatpush3.bf16.msra.mxu1 %v3615_v3 }
  0x88   :  { %2834 = vmatprep.subr.bf16.mxu1 %v3500_v0 }
  0x8a   :  { %2831 = vmatmul.mubr.msk.bf16.vlgmr.msra.gmra.mrb[12].mxu1 %vm174_vm1, %v521_v50 }
  0x8b   :  { %2835 = vmatpush3.bf16.msra.mxu1 %v3718_v39  ;;  %2850 = vmatprep.mubr.msk.bf16.mxu1 %vm3501_vm0, %v3500_v0 }
  0x8c   :  { %2836 = vmatprep.subr.bf16.mxu1 %v3500_v0 }
  0x8f   :  { %2837 = vmatpush3.bf16.msra.mxu1 %v3722_v40 }
  0x90   :  { %2838 = vmatprep.subr.bf16.mxu1 %v3500_v0 }
  0x93   :  { %2839 = vmatpush3.bf16.msra.mxu1 %v3729_v41 }
  0x94   :  { %2840 = vmatprep.subr.bf16.mxu1 %v3500_v0 }
  0x97   :  { %2841 = vmatpush3.bf16.msra.mxu1 %v3735_v43 }
  0x98   :  { %2842 = vmatprep.subr.bf16.mxu1 %v3500_v0 }
  0x9b   :  { %2843 = vmatpush3.bf16.msra.mxu1 %v3740_v46 }
  0x9c   :  { %2844 = vmatprep.subr.bf16.mxu1 %v3500_v0 }
  0x9f   :  { %2845 = vmatpush3.bf16.msra.mxu1 %v3744_v47 }
  0xa0   :  { %2846 = vmatprep.subr.bf16.mxu1 %v3500_v0 }
  0xa3   :  { %2847 = vmatpush3.bf16.msra.mxu1 %v3748_v48 }
  0xa4   :  { %2848 = vmatprep.subr.bf16.mxu1 %v3500_v0 }
  0xa7   :  { %2849 = vmatpush3.bf16.msra.mxu1 %v3752_v49 }
  0xa8   :  { %2854 = vmatprep.subr.bf16.mxu1 %v3500_v0 }
 0x115   :  { %v253_v51 = vpop.f32.mrb[0].mxu1 }
 0x116   :  { %v2804_v52 = vpop.f32.mrb[1].mxu1 }
 0x117   :  { %v256_v53 = vpop.f32.mrb[2].mxu1  ;;  %v137_v52 = vsub.s32 2, %v128_v60 }
 0x118   :  { %v2805_v54 = vpop.f32.mrb[3].mxu1  ;;  %v212_v56 = vpop.f32.mrb[0].mxu0 }
 0x119   :  { %v214_v57 = vpop.f32.mrb[1].mxu0  ;;  %v213_v24 = vadd.f32 %v212_v56, %v3804_v5  ;;  %v3816_v54 = vrot.slane %v120_v20, %v137_v52  ;;  %v3818_v55 = vrot.slane %v119_v63, %v137_v52 }
 0x11a   :  { %v216_v58 = vpop.f32.mrb[2].mxu0  ;;  %v215_v26 = vadd.f32 %v214_v57, %v3806_v23 }
 0x11b   :  { %v217_v59 = vpop.f32.mrb[3].mxu0  ;;  %v3107_v29 = vadd.f32 %v3809_v25, %v213_v24  ;;  %v254_v24 = vadd.f32 %v253_v51, %v3818_v55 }
 0x11c   :  { %v3110_v30 = vadd.f32 %v3812_v27, %v215_v26 }
 0x135   :  { %v437_v31 = vpop.f32.mrb[4].mxu1 }
 0x136   :  { %v3108_v32 = vadd.f32 %v3107_v29, %v437_v31  ;;  %v439_v34 = vpop.f32.mrb[5].mxu1  ;;  %v508_v31 = vpop.permute.xlu0 %507 }
 0x137   :  { %v3111_v35 = vadd.f32 %v3110_v30, %v439_v34  ;;  %v441_v36 = vpop.f32.mrb[6].mxu1 }
 0x138   :  { %v2585_v37 = vmul.f32 -1.442695, %v3108_v32  ;;  %v442_v42 = vpop.f32.mrb[7].mxu1 }
 0x139   :  { %v2586_v44 = vmul.f32 -1.442695, %v3111_v35 }
 0x13a   :  { %3257 = vpow2.f32 %v2585_v37  ;;  %v516_v36 = vpop.permute.xlu0 %515 }
 0x13b   :  { %3259 = vpow2.f32 %v2586_v44  ;;  %v518_v37 = vmul.f32 0.0, %v516_v36 }
 0x144   :  { %v3258_v45 = vpop.eup %3257 }
 0x145   :  { %v488_v50 = vadd.f32 1.0, %v3258_v45  ;;  %v3260_v53 = vpop.eup %3259 }
 0x146   :  { %v495_v56 = vadd.f32 1.0, %v3260_v53 }
 0x147   :  { %3261 = vrcp.f32 %v488_v50 }
 0x148   :  { %3263 = vrcp.f32 %v495_v56  ;;  %v729_v56 = vld [vmem:[#allocation3 + $0x8] sm:$0xf] }
 0x151   :  { %v3262_v61 = vpop.eup %3261 }
 0x152   :  { %v3264_v60 = vpop.eup %3263 }
 0x153   :  { %v501_v20 = vsub.f32 1.0, %v3264_v60  ;;  %v503_v34 = vmul.f32 0.0, %v3264_v60 }
 0x155   :  { %v478_v57 = vpop.f32.mrb[8].mxu1 }
 0x156   :  { %v479_v58 = vadd.f32 %v478_v57, %v3816_v54  ;;  %v2824_v59 = vpop.f32.mrb[9].mxu1  ;;  %v3881_v57 = vadd.f32 %v3809_v25, %v3804_v5 }
 0x157   :  { %v481_v62 = vpop.f32.mrb[10].mxu1 }
 0x158   :  { %v498_v26 = vmul.f32 %v3262_v61, %v479_v58  ;;  %v2825_v29 = vpop.f32.mrb[11].mxu1  ;;  %v3885_v58 = vadd.f32 %v3812_v27, %v3806_v23 }
 0x15a   :  { %v499_v30 = vadd.f32 %v498_v26, %v254_v24 }
 0x15c   :  { %3265 = vtanh.f32 %v499_v30 }
 0x15d   :  { %v3840_v45 = vpop.f32.mrb[12].mxu1 }
 0x15e   :  { %v2832_v50 = vpop.f32.mrb[13].mxu1  ;;  %v604_v36 = vadd.f32 %v3840_v45, %v3818_v55 }
 0x15f   :  { %v606_v52 = vpop.f32.mrb[14].mxu1 }
 0x160   :  { %v2833_v53 = vpop.f32.mrb[15].mxu1  ;;  %v715_v52 = vpop.permute.xlu1 %714 }
 0x166   :  { %v3266_v32 = vpop.eup %3265 }
 0x167   :  { %v502_v63 = vmul.f32 %v3266_v32, %v501_v20 }
 0x169   :  { %v504_v35 = vadd.f32 %v503_v34, %v502_v63 }
 0x16b   :  { %v3822_v42 = vmul.f32 %v508_v31, %v504_v35 }
 0x16d   :  { %v3825_v44 = vadd.f32 %v518_v37, %v3822_v42 }
 0x16f   :  { %v609_v51 = vpack.c.bf16 %v3825_v44, %v3825_v44 }
 0x171   :  { %643 = vmatmul.mubr.bf16.vlgmr.msra.gmra.mrb[4].mxu0 %v609_v51  ;;  %2851 = vmatmul.mubr.bf16.vlgmr.msra.gmra.mrb[16].mxu1 %v609_v51 }
 0x172   :  { %737 = vmatpush1.bf16.msra.mxu0 %v3643_v11  ;;  %2855 = vmatpush3.bf16.msra.mxu1 %v3609_v2 }
 0x173   :  { %738 = vmatprep.subr.bf16.mxu0 %v3648_v12  ;;  %2856 = vmatprep.subr.bf16.mxu1 %v3500_v0 }
 0x174   :  { %768 = vmatprep.mubr.bf16.mxu0 %v3502_v1  ;;  %2858 = vmatprep.mubr.msk.bf16.mxu1 %vm3501_vm0, %v3500_v0 }
 0x176   :  { %739 = vmatpush1.bf16.msra.mxu0 %v3654_v13  ;;  %2857 = vmatpush3.bf16.msra.mxu1 %v3615_v3 }
 0x177   :  { %818 = vmatprep.subr.bf16.mxu0 %v3618_v4  ;;  %2862 = vmatprep.subr.bf16.mxu1 %v3500_v0 }
 0x179   :  { %2593 = vmatmul.mubr.msk.bf16.vlgmr.msra.gmra.mrb[8].mxu0 %vm174_vm1, %v729_v56  ;;  %2859 = vmatmul.mubr.msk.bf16.vlgmr.msra.gmra.mrb[20].mxu1 %vm174_vm1, %v729_v56 }
 0x17a   :  { %819 = vmatpush1.bf16.msra.mxu0 %v3621_v6  ;;  %2863 = vmatpush3.bf16.msra.mxu1 %v3718_v39 }
 0x17b   :  { %820 = vmatprep.subr.bf16.mxu0 %v3624_v7  ;;  %2864 = vmatprep.subr.bf16.mxu1 %v3500_v0 }
 0x17c   :  { %850 = vmatprep.mubr.bf16.mxu0 %v3502_v1  ;;  %2878 = vmatprep.mubr.msk.bf16.mxu1 %vm3501_vm0, %v3500_v0 }
 0x17e   :  { %821 = vmatpush1.bf16.msra.mxu0 %v3633_v9  ;;  %2865 = vmatpush3.bf16.msra.mxu1 %v3722_v40 }
 0x17f   :  { %822 = vmatprep.subr.bf16.mxu0 %v3637_v10  ;;  %2866 = vmatprep.subr.bf16.mxu1 %v3500_v0 }
 0x182   :  { %823 = vmatpush1.bf16.msra.mxu0 %v3657_v14  ;;  %2867 = vmatpush3.bf16.msra.mxu1 %v3729_v41 }
 0x183   :  { %824 = vmatprep.subr.bf16.mxu0 %v3661_v15  ;;  %2868 = vmatprep.subr.bf16.mxu1 %v3500_v0 }
 0x186   :  { %825 = vmatpush1.bf16.msra.mxu0 %v3665_v16  ;;  %2869 = vmatpush3.bf16.msra.mxu1 %v3735_v43 }
 0x187   :  { %826 = vmatprep.subr.bf16.mxu0 %v3669_v17  ;;  %2870 = vmatprep.subr.bf16.mxu1 %v3500_v0 }
 0x18a   :  { %827 = vmatpush1.bf16.msra.mxu0 %v3675_v18  ;;  %2871 = vmatpush3.bf16.msra.mxu1 %v3740_v46 }
 0x18b   :  { %828 = vmatprep.subr.bf16.mxu0 %v3679_v19  ;;  %2872 = vmatprep.subr.bf16.mxu1 %v3500_v0 }
 0x18e   :  { %829 = vmatpush1.bf16.msra.mxu0 %v3686_v21  ;;  %2873 = vmatpush3.bf16.msra.mxu1 %v3744_v47 }
 0x18f   :  { %830 = vmatprep.subr.bf16.mxu0 %v3692_v22  ;;  %2874 = vmatprep.subr.bf16.mxu1 %v3500_v0 }
 0x192   :  { %831 = vmatpush1.bf16.msra.mxu0 %v3705_v28  ;;  %2875 = vmatpush3.bf16.msra.mxu1 %v3748_v48 }
 0x193   :  { %832 = vmatprep.subr.bf16.mxu0 %v3709_v33  ;;  %2876 = vmatprep.subr.bf16.mxu1 %v3500_v0 }
 0x196   :  { %833 = vmatpush1.bf16.msra.mxu0 %v3714_v38  ;;  %2877 = vmatpush3.bf16.msra.mxu1 %v3752_v49 }
 0x197   :  { %944 = vmatprep.subr.bf16.mxu0 %v3630_v8  ;;  %2882 = vmatprep.subr.bf16.mxu1 %v3500_v0 }
 0x244   :  { %v644_v59 = vpop.f32.mrb[4].mxu0  ;;  %v685_v61 = vpop.f32.mrb[16].mxu1 }
 0x245   :  { %v3113_v62 = vadd.f32 %v3881_v57, %v644_v59  ;;  %v646_v24 = vpop.f32.mrb[5].mxu0  ;;  %v2852_v26 = vpop.f32.mrb[17].mxu1  ;;  %v686_v34 = vadd.f32 %v685_v61, %v3816_v54 }
 0x246   :  { %v648_v29 = vpop.f32.mrb[6].mxu0  ;;  %v688_v30 = vpop.f32.mrb[18].mxu1  ;;  %v3115_v32 = vadd.f32 %v3885_v58, %v646_v24 }
 0x247   :  { %v2590_v60 = vmul.f32 -1.442695, %v3113_v62  ;;  %v649_v31 = vpop.f32.mrb[7].mxu0  ;;  %v2853_v20 = vpop.f32.mrb[19].mxu1 }
 0x248   :  { %v2591_v5 = vmul.f32 -1.442695, %v3115_v32  ;;  %v724_v24 = vpop.permute.xlu1 %723  ;;  %v937_v20 = vld [vmem:[#allocation3 + $0xc] sm:$0xf] }
 0x249   :  { %3267 = vpow2.f32 %v2590_v60  ;;  %v726_v29 = vmul.f32 %v724_v24, %v3825_v44 }
 0x24a   :  { %3269 = vpow2.f32 %v2591_v5 }
 0x253   :  { %v3268_v25 = vpop.eup %3267 }
 0x254   :  { %v695_v63 = vadd.f32 1.0, %v3268_v25  ;;  %v3270_v23 = vpop.eup %3269 }
 0x255   :  { %v702_v27 = vadd.f32 1.0, %v3270_v23 }
 0x256   :  { %3271 = vrcp.f32 %v695_v63 }
 0x257   :  { %3273 = vrcp.f32 %v702_v27 }
 0x260   :  { %v3272_v35 = vpop.eup %3271 }
 0x261   :  { %v705_v37 = vmul.f32 %v3272_v35, %v686_v34  ;;  %v3274_v50 = vpop.eup %3273 }
 0x262   :  { %v708_v53 = vsub.f32 1.0, %v3274_v50  ;;  %v710_v62 = vmul.f32 %v3274_v50, %v3825_v44  ;;  %v811_v44 = vpop.f32.mrb[20].mxu1 }
 0x263   :  { %v706_v51 = vadd.f32 %v705_v37, %v604_v36  ;;  %v2860_v60 = vpop.f32.mrb[21].mxu1 }
 0x264   :  { %v923_v60 = vpop.permute.xlu0 %922 }
 0x265   :  { %3275 = vtanh.f32 %v706_v51 }
 0x26f   :  { %v3276_v56 = vpop.eup %3275 }
 0x270   :  { %v709_v59 = vmul.f32 %v3276_v56, %v708_v53 }
 0x272   :  { %v711_v26 = vadd.f32 %v710_v62, %v709_v59 }
 0x274   :  { %v3894_v61 = vmul.f32 %v715_v52, %v711_v26  ;;  %v812_v52 = vadd.f32 %v811_v44, %v3818_v55 }
 0x276   :  { %v3897_v30 = vadd.f32 %v726_v29, %v3894_v61 }
 0x278   :  { %v817_v45 = vpack.c.bf16 %v3897_v30, %v3897_v30 }
 0x27a   :  { %851 = vmatmul.mubr.bf16.vlgmr.msra.gmra.mrb[8].mxu0 %v817_v45  ;;  %2879 = vmatmul.mubr.bf16.vlgmr.msra.gmra.mrb[24].mxu1 %v817_v45 }
 0x27b   :  { %945 = vmatpush1.bf16.msra.mxu0 %v3643_v11  ;;  %2883 = vmatpush3.bf16.msra.mxu1 %v3609_v2  ;;  %v814_v2 = vpop.f32.mrb[22].mxu1 }
 0x27c   :  { %946 = vmatprep.subr.bf16.mxu0 %v3648_v12  ;;  %2884 = vmatprep.subr.bf16.mxu1 %v3500_v0  ;;  %v2861_v31 = vpop.f32.mrb[23].mxu1  ;;  %v932_v2 = vpop.permute.xlu1 %931 }
 0x27d   :  { %976 = vmatprep.mubr.bf16.mxu0 %v3502_v1  ;;  %2886 = vmatprep.mubr.msk.bf16.mxu1 %vm3501_vm0, %v3500_v0  ;;  %v934_v31 = vmul.f32 %v932_v2, %v3897_v30 }
 0x27f   :  { %947 = vmatpush1.bf16.msra.mxu0 %v3654_v13  ;;  %2885 = vmatpush3.bf16.msra.mxu1 %v3615_v3 }
 0x280   :  { %1026 = vmatprep.subr.bf16.mxu0 %v3618_v4  ;;  %2890 = vmatprep.subr.bf16.mxu1 %v3500_v0 }
 0x282   :  { %2598 = vmatmul.mubr.msk.bf16.vlgmr.msra.gmra.mrb[12].mxu0 %vm174_vm1, %v937_v20  ;;  %2887 = vmatmul.mubr.msk.bf16.vlgmr.msra.gmra.mrb[28].mxu1 %vm174_vm1, %v937_v20 }
 0x283   :  { %1027 = vmatpush1.bf16.msra.mxu0 %v3621_v6  ;;  %2891 = vmatpush3.bf16.msra.mxu1 %v3718_v39 }
 0x284   :  { %1028 = vmatprep.subr.bf16.mxu0 %v3624_v7  ;;  %2892 = vmatprep.subr.bf16.mxu1 %v3500_v0 }
 0x285   :  { %1058 = vmatprep.mubr.bf16.mxu0 %v3502_v1  ;;  %2906 = vmatprep.mubr.msk.bf16.mxu1 %vm3501_vm0, %v3500_v0 }
 0x287   :  { %1029 = vmatpush1.bf16.msra.mxu0 %v3633_v9  ;;  %2893 = vmatpush3.bf16.msra.mxu1 %v3722_v40 }
 0x288   :  { %1030 = vmatprep.subr.bf16.mxu0 %v3637_v10  ;;  %2894 = vmatprep.subr.bf16.mxu1 %v3500_v0 }
 0x28b   :  { %1031 = vmatpush1.bf16.msra.mxu0 %v3657_v14  ;;  %2895 = vmatpush3.bf16.msra.mxu1 %v3729_v41 }
 0x28c   :  { %1032 = vmatprep.subr.bf16.mxu0 %v3661_v15  ;;  %2896 = vmatprep.subr.bf16.mxu1 %v3500_v0 }
 0x28f   :  { %1033 = vmatpush1.bf16.msra.mxu0 %v3665_v16  ;;  %2897 = vmatpush3.bf16.msra.mxu1 %v3735_v43 }
 0x290   :  { %1034 = vmatprep.subr.bf16.mxu0 %v3669_v17  ;;  %2898 = vmatprep.subr.bf16.mxu1 %v3500_v0 }
 0x293   :  { %1035 = vmatpush1.bf16.msra.mxu0 %v3675_v18  ;;  %2899 = vmatpush3.bf16.msra.mxu1 %v3740_v46 }
 0x294   :  { %1036 = vmatprep.subr.bf16.mxu0 %v3679_v19  ;;  %2900 = vmatprep.subr.bf16.mxu1 %v3500_v0 }
 0x297   :  { %1037 = vmatpush1.bf16.msra.mxu0 %v3686_v21  ;;  %2901 = vmatpush3.bf16.msra.mxu1 %v3744_v47 }
 0x298   :  { %1038 = vmatprep.subr.bf16.mxu0 %v3692_v22  ;;  %2902 = vmatprep.subr.bf16.mxu1 %v3500_v0 }
 0x29b   :  { %1039 = vmatpush1.bf16.msra.mxu0 %v3705_v28  ;;  %2903 = vmatpush3.bf16.msra.mxu1 %v3748_v48 }
 0x29c   :  { %1040 = vmatprep.subr.bf16.mxu0 %v3709_v33  ;;  %2904 = vmatprep.subr.bf16.mxu1 %v3500_v0 }
 0x29f   :  { %1041 = vmatpush1.bf16.msra.mxu0 %v3714_v38  ;;  %2905 = vmatpush3.bf16.msra.mxu1 %v3752_v49 }
 0x2a0   :  { %1152 = vmatprep.subr.bf16.mxu0 %v3630_v8  ;;  %2910 = vmatprep.subr.bf16.mxu1 %v3500_v0 }
 0x34d   :  { %v852_v3 = vpop.f32.mrb[8].mxu0  ;;  %v893_v4 = vpop.f32.mrb[24].mxu1 }
 0x34e   :  { %v3117_v6 = vadd.f32 %v3881_v57, %v852_v3  ;;  %v854_v7 = vpop.f32.mrb[9].mxu0  ;;  %v2880_v9 = vpop.f32.mrb[25].mxu1  ;;  %v894_v51 = vadd.f32 %v893_v4, %v3816_v54  ;;  %v3966_v4 = vld [vmem:[%s4465_s2 + $0x8] ss:$12 sps:$4 sm:$0xff]  }
 0x34f   :  { %v856_v32 = vpop.f32.mrb[10].mxu0  ;;  %v896_v5 = vpop.f32.mrb[26].mxu1  ;;  %v3119_v27 = vadd.f32 %v3885_v58, %v854_v7 }
 0x350   :  { %v2595_v25 = vmul.f32 -1.442695, %v3117_v6  ;;  %v857_v63 = vpop.f32.mrb[11].mxu0  ;;  %v2881_v23 = vpop.f32.mrb[27].mxu1  ;;  %v1145_v32 = vld [vmem:[#allocation3 + $0x10] sm:$0xf] }
 0x351   :  { %v2596_v34 = vmul.f32 -1.442695, %v3119_v27  ;;  %v3993_v5 = vld [vmem:[#allocation6 + $0x1c] ss:$12 sps:$4 sm:$0xff]  }
 0x352   :  { %3277 = vpow2.f32 %v2595_v25  ;;  %v4000_v25 = vld [vmem:[#allocation6 + $0x18] ss:$12 sps:$4 sm:$0xff]  }
 0x353   :  { %3279 = vpow2.f32 %v2596_v34 }
 0x35c   :  { %v3278_v35 = vpop.eup %3277 }
 0x35d   :  { %v903_v8 = vadd.f32 1.0, %v3278_v35  ;;  %v3280_v36 = vpop.eup %3279 }
 0x35e   :  { %v910_v37 = vadd.f32 1.0, %v3280_v36 }
 0x35f   :  { %3281 = vrcp.f32 %v903_v8 }
 0x360   :  { %3283 = vrcp.f32 %v910_v37 }
 0x369   :  { %v3282_v50 = vpop.eup %3281 }
 0x36a   :  { %v913_v53 = vmul.f32 %v3282_v50, %v894_v51  ;;  %v3284_v59 = vpop.eup %3283 }
 0x36b   :  { %v916_v62 = vsub.f32 1.0, %v3284_v59  ;;  %v918_v29 = vmul.f32 %v3284_v59, %v3897_v30  ;;  %v3981_v30 = vld [vmem:[#allocation6 + $0x4] ss:$12 sps:$4 sm:$0xff]  }
 0x36c   :  { %v914_v56 = vadd.f32 %v913_v53, %v812_v52 }
 0x36e   :  { %3285 = vtanh.f32 %v914_v56 }
 0x378   :  { %v3286_v24 = vpop.eup %3285 }
 0x379   :  { %v917_v26 = vmul.f32 %v3286_v24, %v916_v62 }
 0x37b   :  { %v919_v45 = vadd.f32 %v918_v29, %v917_v26  ;;  %v1131_v26 = vpop.permute.xlu0 %1130  ;;  %v1140_v29 = vpop.permute.xlu1 %1139 }
 0x37d   :  { %v3955_v20 = vmul.f32 %v923_v60, %v919_v45 }
 0x37f   :  { %v3958_v3 = vadd.f32 %v934_v31, %v3955_v20 }
 0x381   :  { %v1025_v44 = vpack.c.bf16 %v3958_v3, %v3958_v3  ;;  %v1142_v60 = vmul.f32 %v1140_v29, %v3958_v3 }
 0x383   :  { %1059 = vmatmul.mubr.bf16.vlgmr.msra.gmra.mrb[12].mxu0 %v1025_v44  ;;  %2907 = vmatmul.mubr.bf16.vlgmr.msra.gmra.mrb[32].mxu1 %v1025_v44  ;;  %v4052_v44 = vld [vmem:[%s4465_s2] ss:$12 sps:$4 sm:$0xff]  }
 0x384   :  { %1153 = vmatpush1.bf16.msra.mxu0 %v3643_v11  ;;  %2911 = vmatpush3.bf16.msra.mxu1 %v3966_v4  ;;  %v3978_v11 = vld [vmem:[%s4465_s2 + $0x20] ss:$12 sps:$4 sm:$0xff]  }
 0x385   :  { %1154 = vmatprep.subr.bf16.mxu0 %v3648_v12  ;;  %2912 = vmatprep.subr.bf16.mxu1 %v3500_v0  ;;  %v3985_v12 = vpop.f32.mrb[28].mxu1 }
 0x386   :  { %1184 = vmatprep.mubr.bf16.mxu0 %v3502_v1  ;;  %2914 = vmatprep.mubr.msk.bf16.mxu1 %vm3501_vm0, %v3500_v0  ;;  %v2888_v6 = vpop.f32.mrb[29].mxu1  ;;  %v1020_v37 = vadd.f32 %v3985_v12, %v3818_v55  ;;  %v4069_v12 = vld [vmem:[%s4465_s2 + $0x18] ss:$12 sps:$4 sm:$0xff]  }
 0x387   :  { %v1022_v7 = vpop.f32.mrb[30].mxu1 }
 0x388   :  { %1155 = vmatpush1.bf16.msra.mxu0 %v3654_v13  ;;  %2913 = vmatpush3.bf16.msra.mxu1 %v3978_v11  ;;  %v2889_v9 = vpop.f32.mrb[31].mxu1  ;;  %v3989_v13 = vld [vmem:[#allocation6] ss:$12 sps:$4 sm:$0xff]  }
 0x389   :  { %1234 = vmatprep.subr.bf16.mxu0 %v3981_v30  ;;  %2918 = vmatprep.subr.bf16.mxu1 %v3500_v0 }
 0x38b   :  { %2603 = vmatmul.mubr.msk.bf16.vlgmr.msra.gmra.mrb[16].mxu0 %vm174_vm1, %v1145_v32  ;;  %2915 = vmatmul.mubr.msk.bf16.vlgmr.msra.gmra.mrb[36].mxu1 %vm174_vm1, %v1145_v32 }
 0x38c   :  { %1235 = vmatpush1.bf16.msra.mxu0 %v3989_v13  ;;  %2919 = vmatpush3.bf16.msra.mxu1 %v3718_v39 }
 0x38d   :  { %1236 = vmatprep.subr.bf16.mxu0 %v3993_v5  ;;  %2920 = vmatprep.subr.bf16.mxu1 %v3500_v0 }
 0x38e   :  { %1266 = vmatprep.mubr.bf16.mxu0 %v3502_v1  ;;  %2934 = vmatprep.mubr.msk.bf16.mxu1 %vm3501_vm0, %v3500_v0 }
 0x390   :  { %1237 = vmatpush1.bf16.msra.mxu0 %v4000_v25  ;;  %2921 = vmatpush3.bf16.msra.mxu1 %v3722_v40 }
 0x391   :  { %1238 = vmatprep.subr.bf16.mxu0 %v3637_v10  ;;  %2922 = vmatprep.subr.bf16.mxu1 %v3500_v0  ;;  %v4031_v10 = vld [vmem:[%s4465_s2 + $0x4] ss:$12 sps:$4 sm:$0xff]  }
 0x394   :  { %1239 = vmatpush1.bf16.msra.mxu0 %v3657_v14  ;;  %2923 = vmatpush3.bf16.msra.mxu1 %v3729_v41 }
 0x395   :  { %1240 = vmatprep.subr.bf16.mxu0 %v3661_v15  ;;  %2924 = vmatprep.subr.bf16.mxu1 %v3500_v0 }
 0x398   :  { %1241 = vmatpush1.bf16.msra.mxu0 %v3665_v16  ;;  %2925 = vmatpush3.bf16.msra.mxu1 %v3735_v43 }
 0x399   :  { %1242 = vmatprep.subr.bf16.mxu0 %v3669_v17  ;;  %2926 = vmatprep.subr.bf16.mxu1 %v3500_v0 }
 0x39c   :  { %1243 = vmatpush1.bf16.msra.mxu0 %v3675_v18  ;;  %2927 = vmatpush3.bf16.msra.mxu1 %v3740_v46 }
 0x39d   :  { %1244 = vmatprep.subr.bf16.mxu0 %v3679_v19  ;;  %2928 = vmatprep.subr.bf16.mxu1 %v3500_v0 }
 0x3a0   :  { %1245 = vmatpush1.bf16.msra.mxu0 %v3686_v21  ;;  %2929 = vmatpush3.bf16.msra.mxu1 %v3744_v47 }
 0x3a1   :  { %1246 = vmatprep.subr.bf16.mxu0 %v3692_v22  ;;  %2930 = vmatprep.subr.bf16.mxu1 %v3500_v0 }
 0x3a4   :  { %1247 = vmatpush1.bf16.msra.mxu0 %v3705_v28  ;;  %2931 = vmatpush3.bf16.msra.mxu1 %v3748_v48 }
 0x3a5   :  { %1248 = vmatprep.subr.bf16.mxu0 %v3709_v33  ;;  %2932 = vmatprep.subr.bf16.mxu1 %v3500_v0 }
 0x3a8   :  { %1249 = vmatpush1.bf16.msra.mxu0 %v3714_v38  ;;  %2933 = vmatpush3.bf16.msra.mxu1 %v3752_v49 }
 0x3a9   :  { %1360 = vmatprep.subr.bf16.mxu0 %v4031_v10  ;;  %2938 = vmatprep.subr.bf16.mxu1 %v3500_v0 }
 0x456   :  { %v1060_v14 = vpop.f32.mrb[12].mxu0  ;;  %v1101_v15 = vpop.f32.mrb[32].mxu1 }
 0x457   :  { %v3121_v16 = vadd.f32 %v3881_v57, %v1060_v14  ;;  %v1062_v17 = vpop.f32.mrb[13].mxu0  ;;  %v2908_v18 = vpop.f32.mrb[33].mxu1  ;;  %v1102_v8 = vadd.f32 %v1101_v15, %v3816_v54  ;;  %v1353_v14 = vld [vmem:[#allocation3 + $0x14] sm:$0xf] }
 0x458   :  { %v1064_v19 = vpop.f32.mrb[14].mxu0  ;;  %v1104_v21 = vpop.f32.mrb[34].mxu1  ;;  %v3123_v38 = vadd.f32 %v3885_v58, %v1062_v17  ;;  %v4088_v15 = vld [vmem:[#allocation6 + $0x34] ss:$12 sps:$4 sm:$0xff]  }
 0x459   :  { %v2600_v22 = vmul.f32 -1.442695, %v3121_v16  ;;  %v1065_v28 = vpop.f32.mrb[15].mxu0  ;;  %v2909_v33 = vpop.f32.mrb[35].mxu1  ;;  %v4096_v16 = vld [vmem:[#allocation6 + $0x4c] ss:$12 sps:$4 sm:$0xff]  }
 0x45a   :  { %v2601_v63 = vmul.f32 -1.442695, %v3123_v38  ;;  %v4100_v17 = vld [vmem:[#allocation6 + $0x48] ss:$12 sps:$4 sm:$0xff]   ;;  %v4108_v18 = vld [vmem:[#allocation6 + $0x60] ss:$12 sps:$4 sm:$0xff]  }
 0x45b   :  { %3287 = vpow2.f32 %v2600_v22  ;;  %v4116_v19 = vld [vmem:[#allocation6 + $0x78] ss:$12 sps:$4 sm:$0xff]   ;;  %v4124_v21 = vld [vmem:[#allocation6 + $0x90] ss:$12 sps:$4 sm:$0xff]   ;;  %v4132_v22 = vld [vmem:[#allocation6 + $0xa8] ss:$12 sps:$4 sm:$0xff]  }
 0x45c   :  { %3289 = vpow2.f32 %v2601_v63 }
 0x45e   :  { %v4075_v6 = vpop.f32.mrb[36].mxu1 }
 0x45f   :  { %v2916_v7 = vpop.f32.mrb[37].mxu1 }
 0x460   :  { %v1230_v9 = vpop.f32.mrb[38].mxu1 }
 0x461   :  { %v2917_v32 = vpop.f32.mrb[39].mxu1  ;;  %v1339_v9 = vpop.permute.xlu0 %1338 }
 0x462   :  { %v1348_v32 = vpop.permute.xlu1 %1347 }
 0x465   :  { %v3288_v23 = vpop.eup %3287 }
 0x466   :  { %v1111_v27 = vadd.f32 1.0, %v3288_v23  ;;  %v3290_v34 = vpop.eup %3289 }
 0x467   :  { %v1118_v35 = vadd.f32 1.0, %v3290_v34 }
 0x468   :  { %3291 = vrcp.f32 %v1111_v27 }
 0x469   :  { %3293 = vrcp.f32 %v1118_v35 }
 0x472   :  { %v3292_v36 = vpop.eup %3291 }
 0x473   :  { %v1121_v51 = vmul.f32 %v3292_v36, %v1102_v8  ;;  %v3294_v52 = vpop.eup %3293 }
 0x474   :  { %v1124_v53 = vsub.f32 1.0, %v3294_v52  ;;  %v1126_v62 = vmul.f32 %v3294_v52, %v3958_v3  ;;  %v4059_v3 = vld [vmem:[%s4465_s2 + $0x1c] ss:$12 sps:$4 sm:$0xff]  }
 0x475   :  { %v1122_v50 = vadd.f32 %v1121_v51, %v1020_v37 }
 0x477   :  { %3295 = vtanh.f32 %v1122_v50 }
 0x481   :  { %v3296_v56 = vpop.eup %3295 }
 0x482   :  { %v1125_v59 = vmul.f32 %v3296_v56, %v1124_v53  ;;  %v1228_v56 = vadd.f32 %v4075_v6, %v3818_v55 }
 0x484   :  { %v1127_v24 = vadd.f32 %v1126_v62, %v1125_v59 }
 0x486   :  { %v4041_v45 = vmul.f32 %v1131_v26, %v1127_v24 }
 0x488   :  { %v4045_v2 = vadd.f32 %v1142_v60, %v4041_v45 }
 0x48a   :  { %v1233_v31 = vpack.c.bf16 %v4045_v2, %v4045_v2 }
 0x48c   :  { %1267 = vmatmul.mubr.bf16.vlgmr.msra.gmra.mrb[16].mxu0 %v1233_v31  ;;  %2935 = vmatmul.mubr.bf16.vlgmr.msra.gmra.mrb[40].mxu1 %v1233_v31 }
 0x48d   :  { %1361 = vmatpush1.bf16.msra.mxu0 %v4052_v44  ;;  %2939 = vmatpush3.bf16.msra.mxu1 %v3966_v4 }
 0x48e   :  { %1362 = vmatprep.subr.bf16.mxu0 %v4059_v3  ;;  %2940 = vmatprep.subr.bf16.mxu1 %v3500_v0 }
 0x48f   :  { %1392 = vmatprep.mubr.bf16.mxu0 %v3502_v1  ;;  %2942 = vmatprep.mubr.msk.bf16.mxu1 %vm3501_vm0, %v3500_v0 }
 0x491   :  { %1363 = vmatpush1.bf16.msra.mxu0 %v4069_v12  ;;  %2941 = vmatpush3.bf16.msra.mxu1 %v3978_v11 }
 0x492   :  { %1442 = vmatprep.subr.bf16.mxu0 %v3981_v30  ;;  %2946 = vmatprep.subr.bf16.mxu1 %v3500_v0 }
 0x494   :  { %2608 = vmatmul.mubr.msk.bf16.vlgmr.msra.gmra.mrb[20].mxu0 %vm174_vm1, %v1353_v14  ;;  %2943 = vmatmul.mubr.msk.bf16.vlgmr.msra.gmra.mrb[44].mxu1 %vm174_vm1, %v1353_v14 }
 0x495   :  { %1443 = vmatpush1.bf16.msra.mxu0 %v3989_v13  ;;  %2947 = vmatpush3.bf16.msra.mxu1 %v3718_v39  ;;  %v4092_v39 = vld [vmem:[#allocation6 + $0x30] ss:$12 sps:$4 sm:$0xff]  }
 0x496   :  { %1444 = vmatprep.subr.bf16.mxu0 %v3993_v5  ;;  %2948 = vmatprep.subr.bf16.mxu1 %v3500_v0 }
 0x497   :  { %1474 = vmatprep.mubr.bf16.mxu0 %v3502_v1  ;;  %2962 = vmatprep.mubr.msk.bf16.mxu1 %vm3501_vm0, %v3500_v0 }
 0x499   :  { %1445 = vmatpush1.bf16.msra.mxu0 %v4000_v25  ;;  %2949 = vmatpush3.bf16.msra.mxu1 %v3722_v40  ;;  %v4104_v40 = vld [vmem:[#allocation6 + $0x64] ss:$12 sps:$4 sm:$0xff]  }
 0x49a   :  { %1446 = vmatprep.subr.bf16.mxu0 %v4088_v15  ;;  %2950 = vmatprep.subr.bf16.mxu1 %v3500_v0 }
 0x49d   :  { %1447 = vmatpush1.bf16.msra.mxu0 %v4092_v39  ;;  %2951 = vmatpush3.bf16.msra.mxu1 %v3729_v41  ;;  %v4112_v41 = vld [vmem:[#allocation6 + $0x7c] ss:$12 sps:$4 sm:$0xff]  }
 0x49e   :  { %1448 = vmatprep.subr.bf16.mxu0 %v4096_v16  ;;  %2952 = vmatprep.subr.bf16.mxu1 %v3500_v0 }
 0x4a1   :  { %1449 = vmatpush1.bf16.msra.mxu0 %v4100_v17  ;;  %2953 = vmatpush3.bf16.msra.mxu1 %v3735_v43  ;;  %v4120_v43 = vld [vmem:[#allocation6 + $0x94] ss:$12 sps:$4 sm:$0xff]  }
 0x4a2   :  { %1450 = vmatprep.subr.bf16.mxu0 %v4104_v40  ;;  %2954 = vmatprep.subr.bf16.mxu1 %v3500_v0 }
 0x4a5   :  { %1451 = vmatpush1.bf16.msra.mxu0 %v4108_v18  ;;  %2955 = vmatpush3.bf16.msra.mxu1 %v3740_v46  ;;  %v4128_v46 = vld [vmem:[#allocation6 + $0xac] ss:$12 sps:$4 sm:$0xff]  }
 0x4a6   :  { %1452 = vmatprep.subr.bf16.mxu0 %v4112_v41  ;;  %2956 = vmatprep.subr.bf16.mxu1 %v3500_v0 }
 0x4a9   :  { %1453 = vmatpush1.bf16.msra.mxu0 %v4116_v19  ;;  %2957 = vmatpush3.bf16.msra.mxu1 %v3744_v47 }
 0x4aa   :  { %1454 = vmatprep.subr.bf16.mxu0 %v4120_v43  ;;  %2958 = vmatprep.subr.bf16.mxu1 %v3500_v0 }
 0x4ad   :  { %1455 = vmatpush1.bf16.msra.mxu0 %v4124_v21  ;;  %2959 = vmatpush3.bf16.msra.mxu1 %v3748_v48 }
 0x4ae   :  { %1456 = vmatprep.subr.bf16.mxu0 %v4128_v46  ;;  %2960 = vmatprep.subr.bf16.mxu1 %v3500_v0 }
 0x4b1   :  { %1457 = vmatpush1.bf16.msra.mxu0 %v4132_v22  ;;  %2961 = vmatpush3.bf16.msra.mxu1 %v3752_v49 }
 0x4b2   :  { %1568 = vmatprep.subr.bf16.mxu0 %v4031_v10  ;;  %2966 = vmatprep.subr.bf16.mxu1 %v3500_v0 }
 0x55f   :  { %v1268_v47 = vpop.f32.mrb[16].mxu0  ;;  %v1309_v28 = vpop.f32.mrb[40].mxu1 }
 0x560   :  { %v3125_v48 = vadd.f32 %v3881_v57, %v1268_v47  ;;  %v1270_v33 = vpop.f32.mrb[17].mxu0  ;;  %v2936_v38 = vpop.f32.mrb[41].mxu1  ;;  %v1310_v52 = vadd.f32 %v1309_v28, %v3816_v54  ;;  %v1350_v47 = vmul.f32 %v1348_v32, %v4045_v2 }
 0x561   :  { %v1272_v63 = vpop.f32.mrb[18].mxu0  ;;  %v1312_v23 = vpop.f32.mrb[42].mxu1  ;;  %v3127_v8 = vadd.f32 %v3885_v58, %v1270_v33 }
 0x562   :  { %v2605_v27 = vmul.f32 -1.442695, %v3125_v48  ;;  %v1273_v34 = vpop.f32.mrb[19].mxu0  ;;  %v2937_v35 = vpop.f32.mrb[43].mxu1  ;;  %v1561_v63 = vld [vmem:[#allocation3 + $0x18] sm:$0xf] }
 0x563   :  { %v2606_v36 = vmul.f32 -1.442695, %v3127_v8  ;;  %v4168_v23 = vld [vmem:[#allocation6 + $0x8] ss:$12 sps:$4 sm:$0xff]   ;;  %v4183_v34 = vld [vmem:[#allocation6 + $0x38] ss:$12 sps:$4 sm:$0xff]  }
 0x564   :  { %3297 = vpow2.f32 %v2605_v27  ;;  %v4177_v27 = vld [vmem:[#allocation6 + $0x20] ss:$12 sps:$4 sm:$0xff]   ;;  %v4189_v35 = vld [vmem:[#allocation6 + $0x50] ss:$12 sps:$4 sm:$0xff]   ;;  %v4195_v8 = vld [vmem:[#allocation6 + $0x68] ss:$12 sps:$4 sm:$0xff]  }
 0x565   :  { %3299 = vpow2.f32 %v2606_v36  ;;  %v4201_v36 = vld [vmem:[#allocation6 + $0x80] ss:$12 sps:$4 sm:$0xff]  }
 0x56e   :  { %v3298_v49 = vpop.eup %3297 }
 0x56f   :  { %v1319_v37 = vadd.f32 1.0, %v3298_v49  ;;  %v3300_v51 = vpop.eup %3299  ;;  %v4207_v49 = vld [vmem:[#allocation6 + $0x98] ss:$12 sps:$4 sm:$0xff]  }
 0x570   :  { %v1326_v50 = vadd.f32 1.0, %v3300_v51 }
 0x571   :  { %3301 = vrcp.f32 %v1319_v37  ;;  %v4213_v37 = vld [vmem:[#allocation6 + $0xb0] ss:$12 sps:$4 sm:$0xff]  }
 0x572   :  { %3303 = vrcp.f32 %v1326_v50 }
 0x57b   :  { %v3302_v53 = vpop.eup %3301 }
 0x57c   :  { %v1329_v59 = vmul.f32 %v3302_v53, %v1310_v52  ;;  %v3304_v24 = vpop.eup %3303 }
 0x57d   :  { %v1332_v26 = vsub.f32 1.0, %v3304_v24  ;;  %v1334_v31 = vmul.f32 %v3304_v24, %v4045_v2  ;;  %v4163_v2 = vpop.f32.mrb[44].mxu1 }
 0x57e   :  { %v1330_v62 = vadd.f32 %v1329_v59, %v1228_v56  ;;  %v2944_v48 = vpop.f32.mrb[45].mxu1 }
 0x57f   :  { %v1438_v33 = vpop.f32.mrb[46].mxu1  ;;  %v1436_v48 = vadd.f32 %v4163_v2, %v3818_v55 }
 0x580   :  { %3305 = vtanh.f32 %v1330_v62  ;;  %v2945_v38 = vpop.f32.mrb[47].mxu1 }
 0x58a   :  { %v3306_v29 = vpop.eup %3305 }
 0x58b   :  { %v1333_v60 = vmul.f32 %v3306_v29, %v1332_v26 }
 0x58d   :  { %v1335_v7 = vadd.f32 %v1334_v31, %v1333_v60 }
 0x58f   :  { %v4144_v14 = vmul.f32 %v1339_v9, %v1335_v7 }
 0x591   :  { %v4148_v28 = vadd.f32 %v1350_v47, %v4144_v14 }
 0x593   :  { %v1441_v6 = vpack.c.bf16 %v4148_v28, %v4148_v28 }
 0x595   :  { %1475 = vmatmul.mubr.bf16.vlgmr.msra.gmra.mrb[20].mxu0 %v1441_v6  ;;  %2963 = vmatmul.mubr.bf16.vlgmr.msra.gmra.mrb[48].mxu1 %v1441_v6 }
 0x596   :  { %1569 = vmatpush1.bf16.msra.mxu0 %v4052_v44  ;;  %2967 = vmatpush3.bf16.msra.mxu1 %v3966_v4 }
 0x597   :  { %1570 = vmatprep.subr.bf16.mxu0 %v4059_v3  ;;  %2968 = vmatprep.subr.bf16.mxu1 %v3500_v0 }
 0x598   :  { %1600 = vmatprep.mubr.bf16.mxu0 %v3502_v1  ;;  %2970 = vmatprep.mubr.msk.bf16.mxu1 %vm3501_vm0, %v3500_v0 }
 0x59a   :  { %1571 = vmatpush1.bf16.msra.mxu0 %v4069_v12  ;;  %2969 = vmatpush3.bf16.msra.mxu1 %v3978_v11 }
 0x59b   :  { %1650 = vmatprep.subr.bf16.mxu0 %v3981_v30  ;;  %2974 = vmatprep.subr.bf16.mxu1 %v3500_v0 }
 0x59d   :  { %2613 = vmatmul.mubr.msk.bf16.vlgmr.msra.gmra.mrb[24].mxu0 %vm174_vm1, %v1561_v63  ;;  %2971 = vmatmul.mubr.msk.bf16.vlgmr.msra.gmra.mrb[52].mxu1 %vm174_vm1, %v1561_v63 }
 0x59e   :  { %1651 = vmatpush1.bf16.msra.mxu0 %v3989_v13  ;;  %2975 = vmatpush3.bf16.msra.mxu1 %v4168_v23 }
 0x59f   :  { %1652 = vmatprep.subr.bf16.mxu0 %v3993_v5  ;;  %2976 = vmatprep.subr.bf16.mxu1 %v3500_v0 }
 0x5a0   :  { %1682 = vmatprep.mubr.bf16.mxu0 %v3502_v1  ;;  %2990 = vmatprep.mubr.msk.bf16.mxu1 %vm3501_vm0, %v3500_v0 }
 0x5a2   :  { %1653 = vmatpush1.bf16.msra.mxu0 %v4000_v25  ;;  %2977 = vmatpush3.bf16.msra.mxu1 %v4177_v27 }
 0x5a3   :  { %1654 = vmatprep.subr.bf16.mxu0 %v4088_v15  ;;  %2978 = vmatprep.subr.bf16.mxu1 %v3500_v0 }
 0x5a6   :  { %1655 = vmatpush1.bf16.msra.mxu0 %v4092_v39  ;;  %2979 = vmatpush3.bf16.msra.mxu1 %v4183_v34 }
 0x5a7   :  { %1656 = vmatprep.subr.bf16.mxu0 %v4096_v16  ;;  %2980 = vmatprep.subr.bf16.mxu1 %v3500_v0 }
 0x5aa   :  { %1657 = vmatpush1.bf16.msra.mxu0 %v4100_v17  ;;  %2981 = vmatpush3.bf16.msra.mxu1 %v4189_v35 }
 0x5ab   :  { %1658 = vmatprep.subr.bf16.mxu0 %v4104_v40  ;;  %2982 = vmatprep.subr.bf16.mxu1 %v3500_v0 }
 0x5ae   :  { %1659 = vmatpush1.bf16.msra.mxu0 %v4108_v18  ;;  %2983 = vmatpush3.bf16.msra.mxu1 %v4195_v8 }
 0x5af   :  { %1660 = vmatprep.subr.bf16.mxu0 %v4112_v41  ;;  %2984 = vmatprep.subr.bf16.mxu1 %v3500_v0 }
 0x5b2   :  { %1661 = vmatpush1.bf16.msra.mxu0 %v4116_v19  ;;  %2985 = vmatpush3.bf16.msra.mxu1 %v4201_v36 }
 0x5b3   :  { %1662 = vmatprep.subr.bf16.mxu0 %v4120_v43  ;;  %2986 = vmatprep.subr.bf16.mxu1 %v3500_v0 }
 0x5b6   :  { %1663 = vmatpush1.bf16.msra.mxu0 %v4124_v21  ;;  %2987 = vmatpush3.bf16.msra.mxu1 %v4207_v49 }
 0x5b7   :  { %1664 = vmatprep.subr.bf16.mxu0 %v4128_v46  ;;  %2988 = vmatprep.subr.bf16.mxu1 %v3500_v0 }
 0x5ba   :  { %1665 = vmatpush1.bf16.msra.mxu0 %v4132_v22  ;;  %2989 = vmatpush3.bf16.msra.mxu1 %v4213_v37 }
 0x5bb   :  { %1776 = vmatprep.subr.bf16.mxu0 %v4031_v10  ;;  %2994 = vmatprep.subr.bf16.mxu1 %v3500_v0 }
 0x668   :  { %v1476_v51 = vpop.f32.mrb[20].mxu0  ;;  %v1517_v50 = vpop.f32.mrb[48].mxu1 }
 0x669   :  { %v3129_v52 = vadd.f32 %v3881_v57, %v1476_v51  ;;  %v1478_v53 = vpop.f32.mrb[21].mxu0  ;;  %v2964_v56 = vpop.f32.mrb[49].mxu1  ;;  %v1518_v47 = vadd.f32 %v1517_v50, %v3816_v54 }
 0x66a   :  { %v1480_v59 = vpop.f32.mrb[22].mxu0  ;;  %v1520_v62 = vpop.f32.mrb[50].mxu1  ;;  %v3131_v60 = vadd.f32 %v3885_v58, %v1478_v53 }
 0x66b   :  { %v2610_v24 = vmul.f32 -1.442695, %v3129_v52  ;;  %v1481_v26 = vpop.f32.mrb[23].mxu0  ;;  %v2965_v29 = vpop.f32.mrb[51].mxu1 }
 0x66c   :  { %v2611_v31 = vmul.f32 -1.442695, %v3131_v60  ;;  %v1547_v62 = vpop.permute.xlu0 %1546  ;;  %v1769_v60 = vld [vmem:[#allocation3 + $0x1c] sm:$0xf] }
 0x66d   :  { %3307 = vpow2.f32 %v2610_v24  ;;  %v1556_v24 = vpop.permute.xlu1 %1555 }
 0x66e   :  { %3309 = vpow2.f32 %v2611_v31  ;;  %v1558_v50 = vmul.f32 %v1556_v24, %v4148_v28 }
 0x677   :  { %v3308_v7 = vpop.eup %3307 }
 0x678   :  { %v1527_v10 = vadd.f32 1.0, %v3308_v7  ;;  %v3310_v9 = vpop.eup %3309  ;;  %v1755_v7 = vpop.permute.xlu0 %1754 }
 0x679   :  { %v1534_v32 = vadd.f32 1.0, %v3310_v9 }
 0x67a   :  { %3311 = vrcp.f32 %v1527_v10  ;;  %v1764_v10 = vpop.permute.xlu1 %1763 }
 0x67b   :  { %3313 = vrcp.f32 %v1534_v32 }
 0x684   :  { %v3312_v6 = vpop.eup %3311 }
 0x685   :  { %v1537_v33 = vmul.f32 %v3312_v6, %v1518_v47  ;;  %v3314_v63 = vpop.eup %3313 }
 0x686   :  { %v1540_v51 = vsub.f32 1.0, %v3314_v63  ;;  %v1542_v56 = vmul.f32 %v3314_v63, %v4148_v28  ;;  %v3228_v63 = vld [vmem:[%s4469_s6 + $0x18] sm:$0xff]  }
 0x687   :  { %v1538_v38 = vadd.f32 %v1537_v33, %v1436_v48  ;;  %v3226_v48 = vld [vmem:[%s4469_s6 + $0x8] sm:$0xff]   ;;  %v1984_v33 = vpack.c.bf16 %v3894_v61, %v3822_v42 }
 0x689   :  { %3315 = vtanh.f32 %v1538_v38  ;;  %v3227_v38 = vld [vmem:[%s4469_s6 + $0x10] sm:$0xff]  }
 0x693   :  { %v3316_v52 = vpop.eup %3315 }
 0x694   :  { %v1541_v53 = vmul.f32 %v3316_v52, %v1540_v51  ;;  %v3229_v51 = vld [vmem:[%s4469_s6 + $0x20] sm:$0xff]   ;;  %v3230_v52 = vld [vmem:[%s4469_s6 + $0x28] sm:$0xff]  }
 0x696   :  { %v1543_v59 = vadd.f32 %v1542_v56, %v1541_v53  ;;  %v3231_v53 = vld [vmem:[%s4469_s6 + $0x30] sm:$0xff]   ;;  %v3232_v56 = vld [vmem:[%s4469_s6 + $0x38] sm:$0xff]  }
 0x698   :  { %v4224_v26 = vmul.f32 %v1547_v62, %v1543_v59  ;;  %v1985_v59 = vpack.c.bf16 %v4041_v45, %v3955_v20 }
 0x69a   :  { %v4228_v29 = vadd.f32 %v1558_v50, %v4224_v26  ;;  %v1986_v62 = vpack.c.bf16 %v4224_v26, %v4144_v14 }
 0x69c   :  { %v1649_v2 = vpack.c.bf16 %v4228_v29, %v4228_v29  ;;  %v1766_v32 = vmul.f32 %v1764_v10, %v4228_v29 }
 0x69e   :  { %1683 = vmatmul.mubr.bf16.vlgmr.msra.gmra.mrb[24].mxu0 %v1649_v2  ;;  %2991 = vmatmul.mubr.bf16.vlgmr.msra.gmra.mrb[56].mxu1 %v1649_v2 }
 0x69f   :  { %1777 = vmatpush1.bf16.msra.mxu0 %v4052_v44  ;;  %2995 = vmatpush3.bf16.msra.mxu1 %v3966_v4  ;;  %v4243_v44 = vpop.f32.mrb[52].mxu1 }
 0x6a0   :  { %1778 = vmatprep.subr.bf16.mxu0 %v4059_v3  ;;  %2996 = vmatprep.subr.bf16.mxu1 %v3500_v0  ;;  %v2972_v4 = vpop.f32.mrb[53].mxu1 }
 0x6a1   :  { %1808 = vmatprep.mubr.bf16.mxu0 %v3502_v1  ;;  %2998 = vmatprep.mubr.msk.bf16.mxu1 %vm3501_vm0, %v3500_v0  ;;  %v1646_v28 = vpop.f32.mrb[54].mxu1  ;;  %v3234_v4 = vld [vmem:[%s4470_s7 + $0x8] sm:$0xff]  }
 0x6a2   :  { %v2973_v3 = vpop.f32.mrb[55].mxu1  ;;  %v3235_v28 = vld [vmem:[%s4473_s10] sm:$0xff]  }
 0x6a3   :  { %1779 = vmatpush1.bf16.msra.mxu0 %v4069_v12  ;;  %2997 = vmatpush3.bf16.msra.mxu1 %v3978_v11  ;;  %v3236_v3 = vld [vmem:[%s4470_s7 + $0x10] sm:$0xff]  }
 0x6a4   :  { %1858 = vmatprep.subr.bf16.mxu0 %v3981_v30  ;;  %3002 = vmatprep.subr.bf16.mxu1 %v3500_v0 }
 0x6a6   :  { %2618 = vmatmul.mubr.msk.bf16.vlgmr.msra.gmra.mrb[28].mxu0 %vm174_vm1, %v1769_v60  ;;  %2999 = vmatmul.mubr.msk.bf16.vlgmr.msra.gmra.mrb[60].mxu1 %vm174_vm1, %v1769_v60  ;;  %v3237_v60 = vld [vmem:[%s4473_s10 + $0x8] sm:$0xff]  }
 0x6a7   :  { %1859 = vmatpush1.bf16.msra.mxu0 %v3989_v13  ;;  %3003 = vmatpush3.bf16.msra.mxu1 %v4168_v23  ;;  %v1644_v23 = vadd.f32 %v4243_v44, %v3818_v55  ;;  %v3233_v44 = vld [vmem:[%s4470_s7] sm:$0xff]  }
 0x6a8   :  { %1860 = vmatprep.subr.bf16.mxu0 %v3993_v5  ;;  %3004 = vmatprep.subr.bf16.mxu1 %v3500_v0 }
 0x6a9   :  { %1890 = vmatprep.mubr.bf16.mxu0 %v3502_v1  ;;  %3018 = vmatprep.mubr.msk.bf16.mxu1 %vm3501_vm0, %v3500_v0  ;;  %v3225_v1 = vld [vmem:[%s4469_s6] sm:$0xff]  }
 0x6ab   :  { %1861 = vmatpush1.bf16.msra.mxu0 %v4000_v25  ;;  %3005 = vmatpush3.bf16.msra.mxu1 %v4177_v27 }
 0x6ac   :  { %1862 = vmatprep.subr.bf16.mxu0 %v4088_v15  ;;  %3006 = vmatprep.subr.bf16.mxu1 %v3500_v0 }
 0x6af   :  { %1863 = vmatpush1.bf16.msra.mxu0 %v4092_v39  ;;  %3007 = vmatpush3.bf16.msra.mxu1 %v4183_v34 }
 0x6b0   :  { %1864 = vmatprep.subr.bf16.mxu0 %v4096_v16  ;;  %3008 = vmatprep.subr.bf16.mxu1 %v3500_v0 }
 0x6b3   :  { %1865 = vmatpush1.bf16.msra.mxu0 %v4100_v17  ;;  %3009 = vmatpush3.bf16.msra.mxu1 %v4189_v35 }
 0x6b4   :  { %1866 = vmatprep.subr.bf16.mxu0 %v4104_v40  ;;  %3010 = vmatprep.subr.bf16.mxu1 %v3500_v0 }
 0x6b7   :  { %1867 = vmatpush1.bf16.msra.mxu0 %v4108_v18  ;;  %3011 = vmatpush3.bf16.msra.mxu1 %v4195_v8 }
 0x6b8   :  { %1868 = vmatprep.subr.bf16.mxu0 %v4112_v41  ;;  %3012 = vmatprep.subr.bf16.mxu1 %v3500_v0 }
 0x6bb   :  { %1869 = vmatpush1.bf16.msra.mxu0 %v4116_v19  ;;  %3013 = vmatpush3.bf16.msra.mxu1 %v4201_v36 }
 0x6bc   :  { %1870 = vmatprep.subr.bf16.mxu0 %v4120_v43  ;;  %3014 = vmatprep.subr.bf16.mxu1 %v3500_v0 }
 0x6bf   :  { %1871 = vmatpush1.bf16.msra.mxu0 %v4124_v21  ;;  %3015 = vmatpush3.bf16.msra.mxu1 %v4207_v49 }
 0x6c0   :  { %1872 = vmatprep.subr.bf16.mxu0 %v4128_v46  ;;  %3016 = vmatprep.subr.bf16.mxu1 %v3500_v0 }
 0x6c3   :  { %1873 = vmatpush1.bf16.msra.mxu0 %v4132_v22  ;;  %3017 = vmatpush3.bf16.msra.mxu1 %v4213_v37 }
 0x6c4   :  { %3022 = vmatprep.subr.bf16.mxu0 %v3225_v1  ;;  %3046 = vmatprep.subr.bf16.mxu1 %v3500_v0 }
 0x771   :  { %v1684_v11 = vpop.f32.mrb[24].mxu0  ;;  %v1725_v30 = vpop.f32.mrb[56].mxu1 }
 0x772   :  { %v3133_v13 = vadd.f32 %v3881_v57, %v1684_v11  ;;  %v1686_v5 = vpop.f32.mrb[25].mxu0  ;;  %v2992_v25 = vpop.f32.mrb[57].mxu1  ;;  %v1726_v46 = vadd.f32 %v1725_v30, %v3816_v54  ;;  %v3239_v11 = vld [vmem:[%s4473_s10 + $0x10] sm:$0xff]   ;;  %v3240_v30 = vld [vmem:[%s4470_s7 + $0x20] sm:$0xff]  }
 0x773   :  { %v1688_v12 = vpop.f32.mrb[26].mxu0  ;;  %v1728_v15 = vpop.f32.mrb[58].mxu1  ;;  %v3135_v40 = vadd.f32 %v3885_v58, %v1686_v5  ;;  %v3242_v5 = vld [vmem:[%s4470_s7 + $0x28] sm:$0xff]   ;;  %v3243_v25 = vld [vmem:[%s4473_s10 + $0x20] sm:$0xff]  }
 0x774   :  { %v2615_v39 = vmul.f32 -1.442695, %v3133_v13  ;;  %v1689_v16 = vpop.f32.mrb[27].mxu0  ;;  %v2993_v17 = vpop.f32.mrb[59].mxu1  ;;  %v3241_v13 = vld [vmem:[%s4473_s10 + $0x18] sm:$0xff]   ;;  %v3244_v12 = vld [vmem:[%s4470_s7 + $0x30] sm:$0xff]  }
 0x775   :  { %v2616_v18 = vmul.f32 -1.442695, %v3135_v40  ;;  %v3245_v15 = vld [vmem:[%s4473_s10 + $0x28] sm:$0xff]   ;;  %v3247_v16 = vld [vmem:[%s4473_s10 + $0x30] sm:$0xff]   ;;  %v3248_v17 = vld [vmem:[%s4473_s10 + $0x38] sm:$0xff]  }
 0x776   :  { %3317 = vpow2.f32 %v2615_v39  ;;  %v3246_v39 = vld [vmem:[%s4470_s7 + $0x38] sm:$0xff]  }
 0x777   :  { %3319 = vpow2.f32 %v2616_v18 }
 0x779   :  { %v4328_v24 = vpop.f32.mrb[60].mxu1 }
 0x77a   :  { %v3000_v50 = vpop.f32.mrb[61].mxu1 }
 0x780   :  { %v3318_v41 = vpop.eup %3317 }
 0x781   :  { %v1735_v19 = vadd.f32 1.0, %v3318_v41  ;;  %v3320_v43 = vpop.eup %3319 }
 0x782   :  { %v1742_v21 = vadd.f32 1.0, %v3320_v43 }
 0x783   :  { %3321 = vrcp.f32 %v1735_v19 }
 0x784   :  { %3323 = vrcp.f32 %v1742_v21 }
 0x78d   :  { %v3322_v22 = vpop.eup %3321 }
 0x78e   :  { %v1745_v27 = vmul.f32 %v3322_v22, %v1726_v46  ;;  %v3324_v35 = vpop.eup %3323 }
 0x78f   :  { %v1748_v8 = vsub.f32 1.0, %v3324_v35  ;;  %v1750_v37 = vmul.f32 %v3324_v35, %v4228_v29  ;;  %v1854_v29 = vpop.f32.mrb[62].mxu1 }
 0x790   :  { %v1746_v34 = vadd.f32 %v1745_v27, %v1644_v23  ;;  %v3001_v2 = vpop.f32.mrb[63].mxu1 }
 0x791   :  { %v3249_v2 = vld [vmem:[%s4472_s9] sm:$0xff]  }
 0x792   :  { %3325 = vtanh.f32 %v1746_v34 }
 0x79c   :  { %v3326_v36 = vpop.eup %3325 }
 0x79d   :  { %v1749_v49 = vmul.f32 %v3326_v36, %v1748_v8 }
 0x79f   :  { %v1751_v31 = vadd.f32 %v1750_v37, %v1749_v49 }
 0x7a1   :  { %v4290_v9 = vmul.f32 %v1755_v7, %v1751_v31  ;;  %v1852_v7 = vadd.f32 %v4328_v24, %v3818_v55 }
 0x7a3   :  { %v4294_v47 = vadd.f32 %v1766_v32, %v4290_v9 }
 0x7a5   :  { %v1857_v6 = vpack.c.bf16 %v4294_v47, %v4294_v47 }
 0x7a7   :  { %1891 = vmatmul.mubr.bf16.vlgmr.msra.gmra.mrb[28].mxu0 %v1857_v6  ;;  %3019 = vmatmul.mubr.bf16.vlgmr.msra.gmra.mrb[64].mxu1 %v1857_v6 }
 0x7a8   :  { %3023 = vmatpush3.bf16.msra.mxu0 %v3225_v1  ;;  %3038 = vmatprep.mubr.bf16.mxu0 %v1984_v33  ;;  %v3238_v1 = vld [vmem:[%s4470_s7 + $0x18] sm:$0xff]  }
 0x7a9   :  { %3024 = vmatprep.subr.bf16.mxu0 %v3226_v48  ;;  %3062 = vmatprep.mubr.msk.bf16.mxu1 %vm3501_vm0, %v3500_v0 }
 0x7aa   :  { %3047 = vmatpush3.bf16.msra.mxu1 %v3233_v44  ;;  %v3251_v44 = vld [vmem:[%s4472_s9 + $0x10] sm:$0xff]  }
 0x7ab   :  { %3048 = vmatprep.subr.bf16.mxu1 %v3500_v0 }
 0x7ac   :  { %3025 = vmatpush3.bf16.msra.mxu0 %v3226_v48 }
 0x7ad   :  { %3026 = vmatprep.subr.bf16.mxu0 %v3227_v38 }
 0x7ae   :  { %3049 = vmatpush3.bf16.msra.mxu1 %v3234_v4 }
 0x7af   :  { %3050 = vmatprep.subr.bf16.mxu1 %v3500_v0 }
 0x7b0   :  { %3027 = vmatpush3.bf16.msra.mxu0 %v3227_v38 }
 0x7b1   :  { %3028 = vmatprep.subr.bf16.mxu0 %v3228_v63 }
 0x7b2   :  { %3051 = vmatpush3.bf16.msra.mxu1 %v3236_v3 }
 0x7b3   :  { %3052 = vmatprep.subr.bf16.mxu1 %v3500_v0 }
 0x7b4   :  { %3029 = vmatpush3.bf16.msra.mxu0 %v3228_v63 }
 0x7b5   :  { %3030 = vmatprep.subr.bf16.mxu0 %v3229_v51 }
 0x7b6   :  { %3053 = vmatpush3.bf16.msra.mxu1 %v3238_v1 }
 0x7b7   :  { %3054 = vmatprep.subr.bf16.mxu1 %v3500_v0 }
 0x7b8   :  { %3031 = vmatpush3.bf16.msra.mxu0 %v3229_v51 }
 0x7b9   :  { %3032 = vmatprep.subr.bf16.mxu0 %v3230_v52 }
 0x7ba   :  { %3055 = vmatpush3.bf16.msra.mxu1 %v3240_v30 }
 0x7bb   :  { %3056 = vmatprep.subr.bf16.mxu1 %v3500_v0 }
 0x7bc   :  { %3033 = vmatpush3.bf16.msra.mxu0 %v3230_v52 }
 0x7bd   :  { %3034 = vmatprep.subr.bf16.mxu0 %v3231_v53 }
 0x7be   :  { %3057 = vmatpush3.bf16.msra.mxu1 %v3242_v5 }
 0x7bf   :  { %3058 = vmatprep.subr.bf16.mxu1 %v3500_v0 }
 0x7c0   :  { %3035 = vmatpush3.bf16.msra.mxu0 %v3231_v53 }
 0x7c1   :  { %3036 = vmatprep.subr.bf16.mxu0 %v3232_v56 }
 0x7c2   :  { %3059 = vmatpush3.bf16.msra.mxu1 %v3244_v12 }
 0x7c3   :  { %3060 = vmatprep.subr.bf16.mxu1 %v3500_v0 }
 0x7c4   :  { %3037 = vmatpush3.bf16.msra.mxu0 %v3232_v56 }
 0x7c5   :  { %3066 = vmatprep.subr.bf16.mxu0 %v3500_v0 }
 0x7c6   :  { %3061 = vmatpush3.bf16.msra.mxu1 %v3246_v39 }
 0x7c7   :  { %3039 = vmatmul.mubr.bf16.vlgmr.msra.gmra.mrb[32].mxu0 %v1985_v59  ;;  %v1972_v59 = vpop.permute.xlu1 %1971 }
 0x7c8   :  { %3042 = vmatprep.mubr.bf16.mxu0 %v1986_v62  ;;  %3067 = vmatpush3.bf16.msra.mxu0 %v3235_v28  ;;  %v1974_v55 = vmul.f32 %v1972_v59, %v4294_v47 }
 0x7c9   :  { %3068 = vmatprep.subr.bf16.mxu0 %v3500_v0 }
 0x7cc   :  { %3069 = vmatpush3.bf16.msra.mxu0 %v3237_v60 }
 0x7cd   :  { %3070 = vmatprep.subr.bf16.mxu0 %v3500_v0 }
 0x7d0   :  { %3071 = vmatpush3.bf16.msra.mxu0 %v3239_v11 }
 0x7d1   :  { %3072 = vmatprep.subr.bf16.mxu0 %v3500_v0 }
 0x7d4   :  { %3073 = vmatpush3.bf16.msra.mxu0 %v3241_v13 }
 0x7d5   :  { %3074 = vmatprep.subr.bf16.mxu0 %v3500_v0 }
 0x7d8   :  { %3075 = vmatpush3.bf16.msra.mxu0 %v3243_v25 }
 0x7d9   :  { %3076 = vmatprep.subr.bf16.mxu0 %v3500_v0 }
 0x7dc   :  { %3077 = vmatpush3.bf16.msra.mxu0 %v3245_v15 }
 0x7dd   :  { %3078 = vmatprep.subr.bf16.mxu0 %v3500_v0 }
 0x7e0   :  { %3079 = vmatpush3.bf16.msra.mxu0 %v3247_v16 }
 0x7e1   :  { %3080 = vmatprep.subr.bf16.mxu0 %v3500_v0 }
 0x7e4   :  { %3081 = vmatpush3.bf16.msra.mxu0 %v3248_v17 }
 0x7e5   :  { %3086 = vmatprep.subr.bf16.mxu0 %v3500_v0 }
 0x87a   :  { %v1892_v40 = vpop.f32.mrb[28].mxu0  ;;  %v1933_v18 = vpop.f32.mrb[64].mxu1 }
 0x87b   :  { %v3137_v41 = vadd.f32 %v3881_v57, %v1892_v40  ;;  %v1894_v19 = vpop.f32.mrb[29].mxu0  ;;  %v3020_v43 = vpop.f32.mrb[65].mxu1  ;;  %v1934_v31 = vadd.f32 %v1933_v18, %v3816_v54 }
 0x87c   :  { %v1896_v21 = vpop.f32.mrb[30].mxu0  ;;  %v1936_v46 = vpop.f32.mrb[66].mxu1  ;;  %v3139_v34 = vadd.f32 %v3885_v58, %v1894_v19 }
 0x87d   :  { %v2620_v22 = vmul.f32 -1.442695, %v3137_v41  ;;  %v1897_v23 = vpop.f32.mrb[31].mxu0  ;;  %v3021_v27 = vpop.f32.mrb[67].mxu1 }
 0x87e   :  { %v2621_v35 = vmul.f32 -1.442695, %v3139_v34  ;;  %v1963_v54 = vpop.permute.xlu0 %1962 }
 0x87f   :  { %3327 = vpow2.f32 %v2620_v22 }
 0x880   :  { %3329 = vpow2.f32 %v2621_v35 }
 0x889   :  { %v3328_v8 = vpop.eup %3327 }
 0x88a   :  { %v1943_v36 = vadd.f32 1.0, %v3328_v8  ;;  %v3330_v49 = vpop.eup %3329 }
 0x88b   :  { %v1950_v37 = vadd.f32 1.0, %v3330_v49 }
 0x88c   :  { %3331 = vrcp.f32 %v1943_v36 }
 0x88d   :  { %3333 = vrcp.f32 %v1950_v37 }
 0x896   :  { %v3332_v57 = vpop.eup %3331 }
 0x897   :  { %v1953_v10 = vmul.f32 %v3332_v57, %v1934_v31  ;;  %v3334_v38 = vpop.eup %3333 }
 0x898   :  { %v1956_v63 = vsub.f32 1.0, %v3334_v38  ;;  %v1958_v53 = vmul.f32 %v3334_v38, %v4294_v47  ;;  %v3250_v47 = vld [vmem:[%s4472_s9 + $0x8] sm:$0xff]  }
 0x899   :  { %v1954_v32 = vadd.f32 %v1953_v10, %v1852_v7 }
 0x89a   :  { %v3040_v6 = vpop.f32.mrb[32].mxu0 }
 0x89b   :  { %3335 = vtanh.f32 %v1954_v32  ;;  %v2086_v58 = vpop.f32.mrb[33].mxu0 }
 0x89c   :  { %v3041_v48 = vpop.f32.mrb[34].mxu0 }
 0x89d   :  { %v2089_v33 = vpop.f32.mrb[35].mxu0 }
 0x8a5   :  { %v3336_v51 = vpop.eup %3335 }
 0x8a6   :  { %v1957_v52 = vmul.f32 %v3336_v51, %v1956_v63 }
 0x8a8   :  { %v1959_v56 = vadd.f32 %v1958_v53, %v1957_v52 }
 0x8aa   :  { %v4399_v62 = vmul.f32 %v1963_v54, %v1959_v56 }
 0x8ac   :  { %v1987_v24 = vpack.c.bf16 %v4399_v62, %v4290_v9  ;;  %v1975_v50 = vadd.f32 %v1974_v55, %v4399_v62 }
 0x8ae   :  { %3043 = vmatmul.mubr.bf16.gmra.mrb[36].mxu0 %v1987_v24  ;;  %v2117_v29 = vpack.c.bf16 %v1975_v50, %v1975_v50 }
 0x8af   :  { %3082 = vmatprep.mubr.msk.bf16.mxu0 %vm3501_vm0, %v3500_v0 }
 0x8b0   :  { %3063 = vmatmul.mubr.bf16.vlgmr.msra.gmra.mrb[68].mxu1 %v2117_v29 }
 0x8b6   :  { %3083 = vmatmul.mubr.bf16.vlgmr.msra.gmra.mrb[40].mxu0 %v2117_v29 }
 0x8b7   :  { %3102 = vmatprep.mubr.msk.bf16.mxu0 %vm3501_vm0, %v3500_v0  ;;  %3087 = vmatpush3.bf16.msra.mxu0 %v3249_v2 }
 0x8b8   :  { %3088 = vmatprep.subr.bf16.mxu0 %v3500_v0 }
 0x8bb   :  { %3089 = vmatpush3.bf16.msra.mxu0 %v3250_v47 }
 0x8bc   :  { %3090 = vmatprep.subr.bf16.mxu0 %v3500_v0 }
 0x8bf   :  { %3091 = vmatpush3.bf16.msra.mxu0 %v3251_v44 }
 0x8c0   :  { %3092 = vmatprep.subr.bf16.mxu0 %v3500_v0 }
 0x981   :  { %v3044_v4 = vpop.f32.mrb[36].mxu0 }
 0x982   :  { %v2102_v28 = vpop.f32.mrb[37].mxu0 }
 0x983   :  { %v3045_v3 = vpop.f32.mrb[38].mxu0  ;;  %v2216_v60 = vpop.f32.mrb[68].mxu1 }
 0x984   :  { %v2105_v1 = vpop.f32.mrb[39].mxu0  ;;  %v3064_v11 = vpop.f32.mrb[69].mxu1  ;;  %v2222_v30 = vadd.f32 %v2216_v60, %v2086_v58  ;;  %v2223_v13 = vadd.f32 %v2216_v60, %v2089_v33  ;;  %v2224_v5 = vadd.f32 %v3040_v6, %v2216_v60  ;;  %v2226_v25 = vadd.f32 %v2216_v60, %v2102_v28  ;;  %v2646_v33 = vld [vmem:[%s4471_s8] ss:$0 sm:$0xff] }
 0x985   :  { %v2227_v12 = vadd.f32 %v2216_v60, %v2105_v1  ;;  %v2219_v15 = vpop.f32.mrb[70].mxu1  ;;  %v2225_v39 = vadd.f32 %v3041_v48, %v2216_v60  ;;  %v2228_v16 = vadd.f32 %v3044_v4, %v2216_v60  ;;  %v2229_v17 = vadd.f32 %v3045_v3, %v2216_v60  ;;  %v3252_v3 = vld [vmem:[%s4472_s9 + $0x18] sm:$0xff]   ;;  %v3253_v60 = vld [vmem:[%s4472_s9 + $0x20] sm:$0xff]   ;;  %v3254_v1 = vld [vmem:[%s4472_s9 + $0x28] sm:$0xff]  }
 0x986   :  { %v3065_v40 = vpop.f32.mrb[71].mxu1  ;;  %v2638_v18 = vmul.f32 -1.442695, %v2222_v30  ;;  %v2639_v41 = vmul.f32 -1.442695, %v2223_v13  ;;  %3093 = vmatpush3.bf16.msra.mxu0 %v3252_v3  ;;  %v3255_v11 = vld [vmem:[%s4472_s9 + $0x30] sm:$0xff]  }
 0x987   :  { %v2643_v19 = vmul.f32 -1.442695, %v2227_v12  ;;  %v2640_v43 = vmul.f32 -1.442695, %v2224_v5  ;;  %v2642_v21 = vmul.f32 -1.442695, %v2226_v25  ;;  %3094 = vmatprep.subr.bf16.mxu0 %v3500_v0 }
 0x988   :  { %3337 = vpow2.f32 %v2638_v18  ;;  %v2641_v46 = vmul.f32 -1.442695, %v2225_v39  ;;  %v2644_v22 = vmul.f32 -1.442695, %v2228_v16  ;;  %v2645_v23 = vmul.f32 -1.442695, %v2229_v17 }
 0x989   :  { %3339 = vpow2.f32 %v2643_v19  ;;  %v3256_v30 = vld [vmem:[%s4472_s9 + $0x38] sm:$0xff]   ;;  %s3503_s9 = smov [#allocation9]  }
 0x98a   :  { %3341 = vpow2.f32 %v2639_v41  ;;  %3095 = vmatpush3.bf16.msra.mxu0 %v3253_v60  ;;  %s2542_s1 = sshll.u32 %s3503_s9, 4  ;;  %s2543_s1 = int_to_ptr.vmem [resolvable:$true] %s2542_s1 }
 0x98b   :  { %3343 = vpow2.f32 %v2640_v43  ;;  %3096 = vmatprep.subr.bf16.mxu0 %v3500_v0  ;;  %s3465_s30 = scalar_lea.vmem %s2543_s1, 64  ;;  %p3470_p11 = scmp.lt.s32.totalorder %s2543_s1, %s2543_s1 }
 0x98c   :  { %3345 = vpow2.f32 %v2642_v21  ;;  %p3466_p10 = scmp.ne.s32.totalorder %s2543_s1, %s3465_s30  ;;  %p3471_p12 = scmp.lt.s32.totalorder %s3465_s30, %s3465_s30 }
 0x98d   :  { %3347 = vpow2.f32 %v2641_v46 }
 0x98e   :  { %3349 = vpow2.f32 %v2644_v22  ;;  %3097 = vmatpush3.bf16.msra.mxu0 %v3254_v1  ;;  %p3472_p13 = por %p3471_p12, %p3470_p11 }
 0x98f   :  { %3351 = vpow2.f32 %v2645_v23  ;;  %3098 = vmatprep.subr.bf16.mxu0 %v3500_v0 }
 0x990   :  { %p3473_p0 = pnand %p3472_p13, %p3466_p10 }
 0x992   :  { %v3338_v27 = vpop.eup %3337  ;;  %3099 = vmatpush3.bf16.msra.mxu0 %v3255_v11 }
 0x993   :  { %v3340_v34 = vpop.eup %3339  ;;  %v2254_v35 = vadd.f32 1.0, %v3338_v27  ;;  %3100 = vmatprep.subr.bf16.mxu0 %v3500_v0 }
 0x994   :  { %v3342_v8 = vpop.eup %3341  ;;  %v2259_v58 = vadd.f32 1.0, %v3340_v34 }
 0x995   :  { %v3344_v36 = vpop.eup %3343  ;;  %3353 = vrcp.f32 %v2254_v35  ;;  %v2255_v49 = vadd.f32 1.0, %v3342_v8 }
 0x996   :  { %v3346_v37 = vpop.eup %3345  ;;  %v2256_v31 = vadd.f32 1.0, %v3344_v36  ;;  %3101 = vmatpush3.bf16.msra.mxu0 %v3256_v30 }
 0x997   :  { %v3348_v57 = vpop.eup %3347  ;;  %3355 = vrcp.f32 %v2255_v49  ;;  %v2258_v7 = vadd.f32 1.0, %v3346_v37 }
 0x998   :  { %v3350_v10 = vpop.eup %3349  ;;  %3357 = vrcp.f32 %v2256_v31  ;;  %v2257_v32 = vadd.f32 1.0, %v3348_v57 }
 0x999   :  { %3359 = vrcp.f32 %v2258_v7  ;;  %v2260_v6 = vadd.f32 1.0, %v3350_v10  ;;  %v3352_v48 = vpop.eup %3351 }
 0x99a   :  { %3361 = vrcp.f32 %v2257_v32  ;;  %v2261_v63 = vadd.f32 1.0, %v3352_v48 }
 0x99b   :  { %3363 = vrcp.f32 %v2260_v6 }
 0x99c   :  { %3365 = vrcp.f32 %v2259_v58 }
 0x99d   :  { %3367 = vrcp.f32 %v2261_v63 }
 0x99f   :  { %v3354_v38 = vpop.eup %3353 }
 0x9a0   :  { %v2285_v51 = vmul.f32 %v3354_v38, %v2646_v33 }
 0x9a1   :  { %v3356_v52 = vpop.eup %3355 }
 0x9a2   :  { %v3358_v53 = vpop.eup %3357  ;;  %2293 = vadd.xlane.f32.xlu0 %v2285_v51  ;;  %v2286_v56 = vmul.f32 %v3356_v52, %v2646_v33 }
 0x9a3   :  { %v3360_v54 = vpop.eup %3359  ;;  %v2287_v59 = vmul.f32 %v3358_v53, %v2646_v33 }
 0x9a4   :  { %2295 = vadd.xlane.f32.xlu1 %v2286_v56  ;;  %v3362_v55 = vpop.eup %3361  ;;  %v2289_v24 = vmul.f32 %v3360_v54, %v2646_v33 }
 0x9a5   :  { %v3364_v50 = vpop.eup %3363  ;;  %v2288_v29 = vmul.f32 %v3362_v55, %v2646_v33 }
 0x9a6   :  { %2297 = vadd.xlane.f32.xlu0 %v2287_v59  ;;  %v3366_v2 = vpop.eup %3365  ;;  %v2291_v47 = vmul.f32 %v3364_v50, %v2646_v33 }
 0x9a7   :  { %v2290_v44 = vmul.f32 %v3366_v2, %v2646_v33  ;;  %v3368_v4 = vpop.eup %3367 }
 0x9a8   :  { %2301 = vadd.xlane.f32.xlu1 %v2289_v24  ;;  %v2292_v28 = vmul.f32 %v3368_v4, %v2646_v33 }
 0x9aa   :  { %2299 = vadd.xlane.f32.xlu0 %v2288_v29 }
 0x9ac   :  { %2305 = vadd.xlane.f32.xlu1 %v2291_v47 }
 0x9ae   :  { %2303 = vadd.xlane.f32.xlu0 %v2290_v44 }
 0x9b2   :  { %2307 = vadd.xlane.f32.xlu0 %v2292_v28 }
 0xa2f   :  { %v2294_v13 = vpop.xlane.xlu0 %2293 }
 0xa30   :  { %v2309_v25 = vmul.f32 %v2294_v13, %v3822_v42 }
 0xa31   :  { %v2296_v5 = vpop.xlane.xlu1 %2295 }
 0xa32   :  { %v2310_v12 = vmul.f32 %v2296_v5, %v3894_v61 }
 0xa33   :  { %v2298_v15 = vpop.xlane.xlu0 %2297 }
 0xa34   :  { %v2311_v39 = vmul.f32 %v2298_v15, %v3955_v20  ;;  %v2317_v17 = vadd.f32 %v2310_v12, %v2309_v25 }
 0xa35   :  { %v2302_v16 = vpop.xlane.xlu1 %2301 }
 0xa36   :  { %v2318_v18 = vadd.f32 %v2317_v17, %v2311_v39  ;;  %v2313_v41 = vmul.f32 %v2302_v16, %v4144_v14 }
 0xa37   :  { %v2300_v40 = vpop.xlane.xlu0 %2299 }
 0xa38   :  { %v2312_v0 = vmul.f32 %v2300_v40, %v4041_v45 }
 0xa39   :  { %v2306_v43 = vpop.xlane.xlu1 %2305 }
 0xa3a   :  { %v2319_v19 = vadd.f32 %v2318_v18, %v2312_v0  ;;  %v2315_v42 = vmul.f32 %v2306_v43, %v4290_v9 }
 0xa3b   :  { %v2304_v21 = vpop.xlane.xlu0 %2303 }
 0xa3c   :  { %v2320_v46 = vadd.f32 %v2319_v19, %v2313_v41  ;;  %v2314_v22 = vmul.f32 %v2304_v21, %v4224_v26 }
 0xa3e   :  { %v2321_v61 = vadd.f32 %v2320_v46, %v2314_v22 }
 0xa3f   :  { %v2308_v23 = vpop.xlane.xlu0 %2307 }
 0xa40   :  { %v2322_v27 = vadd.f32 %v2321_v61, %v2315_v42  ;;  %v2316_v20 = vmul.f32 %v2308_v23, %v4399_v62 }
 0xa42   :  { %v2323_v34 = vadd.f32 %v2322_v27, %v2316_v20 }
 0xa44   :  { %v2324_v35 = vpack.c.bf16 %v2323_v34, %v2323_v34 }
 0xa46   :  { %3103 = vmatmul.mubr.bf16.vlgmr.msra.gmra.mrb[40].mxu0 %v2324_v35 }
 0xb19   :  { %v2527_v45 = vpop.f32.mrb[40].mxu0 }
 0xb1a   :  { %v2533_v14 = vpack.c.bf16 %v2527_v45, %v2527_v45  ;;  %v3104_v8 = vpop.f32.mrb[41].mxu0 }
 0xb1b   :  { %v2530_v36 = vpop.f32.mrb[42].mxu0 }
 0xb1c   :  { %v3105_v49 = vpop.f32.mrb[43].mxu0  ;;  %2535 = vst.msk [vmem:[#allocation9] sm:$0xf] %vm2534_vm10, %v2533_v14 }
 0xb1d   :  { %3476 = shalt.err (!%p3473_p0)
}
 0xb1e   :  { %s3477_s14 = scalar_lea.hbm %s4474_s11, 64 }
 0xb1f   :  { %p3478_p1 = scmp.ne.s32.totalorder %s4474_s11, %s3477_s14  ;;  %p3481_p2 = scmp.lt.u32.totalorder %s3477_s14, %s4474_s11 }
 0xb21   :  { %p3483_p3 = pnand %p3481_p2, %p3478_p1 }
 0xb23   :  { %3486 = shalt.err (!%p3483_p3)
}
 0xb24   :  { %2545 = dma.vmem_to_hbm [thread:$0]  %s2543_s1, 64, %s4474_s11, [#allocation5]  }
 0xb25   :  { %3491 = dma.done.wait [#allocation5], 64  }
 0xb26   :  { %3492 = vsyncadd [#allocation5], 4294967232 }
 0xb27   :  { %2549 = vsyncpa [#allocation4], 1 }
 0xb28   :  { %2550 = vsyncpa [#allocation7], 1 }
 0xb29   :  { %2551 = vsyncpa [#allocation5], 1 }

</bundles_post_ra>
